<compile_context>
chip_gen: v7x
topology: tpu7x:2x2x1
jax: 0.10.0
libtpu: 0.0.40
codegen_flags: <defaults>
</compile_context>

<pallas_src>
import numpy as np
import jax
import jax.numpy as jnp
from jax.experimental import pallas as pl
from jax.experimental.pallas import tpu as pltpu


def _vmem_limit_bytes():
    # v7x has only 64 MiB/TC physical VMEM -> leave headroom for double buffers
    # and compiler scratch; v5e/v6e (128 MiB physical) get a larger budget.
    try:
        cap = int(pltpu.get_tpu_info().vmem_capacity_bytes)
    except Exception:
        cap = 64 * 1024 * 1024
    return min(cap * 3 // 4, 96 * 1024 * 1024)


# ---------------------------------------------------------------------------
# Fused whole-model kernel: TCN trunk -> exact prefix softmax -> output head.
# ---------------------------------------------------------------------------
def _make_model_kernel(block_meta, S, has_mask):
    """block_meta: tuple of dicts {"K", "dilation", "has_ds"} per TemporalBlock."""

    def kernel(*refs):
        it = iter(refs)
        x_ref = next(it)
        mask_ref = next(it) if has_mask else None

        # Hoisted causal row index, reused for every shifted tap.
        row_idx = jax.lax.broadcasted_iota(jnp.int32, (S, 1), 0)

        def shift_down(v, shift):
            # out[t] = v[t - shift] for t >= shift else 0 (causal time shift).
            if shift == 0:
                return v
            if shift >= S:
                return jnp.zeros_like(v)
            rolled = pltpu.roll(v, shift=shift, axis=0)      # XLU sublane rotate
            return jnp.where(row_idx >= shift, rolled, jnp.zeros_like(rolled))

        def conv_relu(v, w_ref, b_ref, K, dilation):
            # Dilated causal conv (+bias, ReLU) as K per-tap MXU matmuls.
            # TODO(synk): on v6e/v7x cast v to bf16 before the rolls to halve
            # XLU/VALU shift traffic (keep f32 selects on v5e).
            acc = None
            for k in range(K):
                xs = shift_down(v, (K - 1 - k) * dilation).astype(jnp.bfloat16)
                y = jnp.dot(xs, w_ref[k], preferred_element_type=jnp.float32)
                acc = y if acc is None else acc + y
            return jnp.maximum(acc + b_ref[...], 0.0)

        # ---- TCN trunk: all TemporalBlocks chained in VMEM ----
        h = x_ref[0]                                         # (S, Cin) f32
        for m in block_meta:
            w1 = next(it); b1 = next(it); w2 = next(it); b2 = next(it)
            if m["has_ds"]:
                wd = next(it); bd = next(it)
            h1 = conv_relu(h, w1, b1, m["K"], m["dilation"])
            h2 = conv_relu(h1, w2, b2, m["K"], m["dilation"])
            if m["has_ds"]:
                res = jnp.dot(h.astype(jnp.bfloat16), wd[...],
                              preferred_element_type=jnp.float32) + bd[...]
            else:
                res = h
            h = jnp.maximum(h2 + res, 0.0)                   # (S, Cout) f32

        aw1 = next(it); ab1 = next(it); aw2 = next(it); ab2 = next(it)
        ow1 = next(it); ob1 = next(it); ow2 = next(it); ob2 = next(it)
        o_ref = next(it)

        # ---- attention scores (MLP: H -> H/2 tanh -> 1) ----
        f = h
        if has_mask:
            f = f * mask_ref[0]                              # (S,1) broadcast over H
        fb = f.astype(jnp.bfloat16)
        a1 = jnp.tanh(jnp.dot(fb, aw1[...],
                              preferred_element_type=jnp.float32) + ab1[...])
        sc = jnp.dot(a1.astype(jnp.bfloat16), aw2[...],
                     preferred_element_type=jnp.float32) + ab2[...]      # (S,1)
        if has_mask:
            sc = jnp.where(mask_ref[0] == 0.0, jnp.full_like(sc, -1e9), sc)

        # ---- exact per-prefix softmax via a causal (S,S) score matrix ----
        # scores[t, j] = sc[j]; built with one tiny NT matmul (no transposes).
        ones_col = jnp.ones((S, 1), jnp.float32)
        scores = jax.lax.dot_general(
            ones_col, sc, (((1,), (1,)), ((), ())),
            preferred_element_type=jnp.float32)              # (S, S)
        t_idx = jax.lax.broadcasted_iota(jnp.int32, (S, S), 0)
        j_idx = jax.lax.broadcasted_iota(jnp.int32, (S, S), 1)
        scores = jnp.where(j_idx <= t_idx, scores, -1e30)
        m_t = jnp.max(scores, axis=-1, keepdims=True)        # per-prefix max (S,1)
        p = jnp.exp(scores - m_t)
        den = jnp.sum(p, axis=-1, keepdims=True)             # (S,1), >= 1
        w = p * pl.reciprocal(den, approx=True)              # normalized weights
        comb = jnp.dot(w.astype(jnp.bfloat16), fb,
                       preferred_element_type=jnp.float32)   # (S, H) on the MXU

        # ---- output head (H -> H/2 relu -> 1, sigmoid) ----
        o1 = jnp.maximum(
            jnp.dot(comb.astype(jnp.bfloat16), ow1[...],
                    preferred_element_type=jnp.float32) + ob1[...], 0.0)
        logit = jnp.dot(o1.astype(jnp.bfloat16), ow2[...],
                        preferred_element_type=jnp.float32) + ob2[...]   # (S,1)
        # Relay the logit column to a lane-dense row, then store (1,1,S).
        one_row = jnp.ones((1, 1), jnp.float32)
        logit_row = jax.lax.dot_general(
            one_row, logit, (((1,), (1,)), ((), ())),
            preferred_element_type=jnp.float32)              # (1, S)
        o_ref[0] = jax.nn.sigmoid(logit_row)

    return kernel


# ---------------------------------------------------------------------------
# Wrapper: one pallas_call for the whole model.
# ---------------------------------------------------------------------------
def sepsis_tcn_forward(x, params, mask=None):
    # TODO(synk): for long sequences / 512-channel trunks add an S-tile grid
    # axis with a (K-1)*dilation halo (and flash-style carry in the head) to
    # bound VMEM on v7x, and pack several batch rows per grid step when S*C is
    # small to amortize per-step pipeline overhead.
    B, S, Cin0 = x.shape
    blocks = params["blocks"]
    has_mask = mask is not None

    args = [x]
    in_specs = [pl.BlockSpec((1, S, Cin0), lambda i: (i, 0, 0))]
    if has_mask:
        # Column orientation (B,S,1): needed to multiply the (S,H) features.
        args.append(mask.astype(jnp.float32).reshape(B, S, 1))
        in_specs.append(pl.BlockSpec((1, S, 1), lambda i: (i, 0, 0)))

    block_meta = []
    for bi, blk in enumerate(blocks):
        K, cin, cout = blk["w1"].shape
        has_ds = blk["wd"] is not None
        block_meta.append({"K": K, "dilation": 2 ** bi, "has_ds": has_ds})
        args += [blk["w1"].astype(jnp.bfloat16), blk["b1"].reshape(1, cout),
                 blk["w2"].astype(jnp.bfloat16), blk["b2"].reshape(1, cout)]
        in_specs += [
            pl.BlockSpec((K, cin, cout), lambda i: (0, 0, 0)),
            pl.BlockSpec((1, cout), lambda i: (0, 0)),
            pl.BlockSpec((K, cout, cout), lambda i: (0, 0, 0)),
            pl.BlockSpec((1, cout), lambda i: (0, 0)),
        ]
        if has_ds:
            args += [blk["wd"].astype(jnp.bfloat16), blk["bd"].reshape(1, cout)]
            in_specs += [pl.BlockSpec((cin, cout), lambda i: (0, 0)),
                         pl.BlockSpec((1, cout), lambda i: (0, 0))]

    H = blocks[-1]["w1"].shape[2]
    Hh = params["att_w1"].shape[1]
    args += [params["att_w1"].astype(jnp.bfloat16), params["att_b1"].reshape(1, Hh),
             params["att_w2"].astype(jnp.bfloat16), params["att_b2"].reshape(1, 1),
             params["out_w1"].astype(jnp.bfloat16), params["out_b1"].reshape(1, Hh),
             params["out_w2"].astype(jnp.bfloat16), params["out_b2"].reshape(1, 1)]
    in_specs += [pl.BlockSpec((H, Hh), lambda i: (0, 0)),
                 pl.BlockSpec((1, Hh), lambda i: (0, 0)),
                 pl.BlockSpec((Hh, 1), lambda i: (0, 0)),
                 pl.BlockSpec((1, 1), lambda i: (0, 0)),
                 pl.BlockSpec((H, Hh), lambda i: (0, 0)),
                 pl.BlockSpec((1, Hh), lambda i: (0, 0)),
                 pl.BlockSpec((Hh, 1), lambda i: (0, 0)),
                 pl.BlockSpec((1, 1), lambda i: (0, 0))]

    out = pl.pallas_call(
        _make_model_kernel(tuple(block_meta), S, has_mask),
        out_shape=jax.ShapeDtypeStruct((B, 1, S), jnp.float32),
        grid=(B,),
        in_specs=in_specs,
        out_specs=pl.BlockSpec((1, 1, S), lambda i: (i, 0, 0)),
        compiler_params=pltpu.CompilerParams(
            dimension_semantics=("parallel",),
            vmem_limit_bytes=_vmem_limit_bytes()),
    )(*args)
    return out.reshape(B, S, 1)


# ---------------------------------------------------------------------------
# Deterministic parameter initialization (shapes per SepsisTCNModel.__init__).
# Conv weights stored tap-major (K, Cin, Cout); tap k multiplies the input
# shifted by (K-1-k)*dilation (weight_norm folded / effective weights).
# ---------------------------------------------------------------------------
def init_params(key, input_dim, hidden_dims, kernel_size):
    keys = iter(jax.random.split(key, 64))
    blocks = []
    cin = input_dim
    for cout in hidden_dims:
        blk = {
            "w1": 0.01 * jax.random.normal(next(keys), (kernel_size, cin, cout), jnp.float32),
            "b1": 0.01 * jax.random.normal(next(keys), (cout,), jnp.float32),
            "w2": 0.01 * jax.random.normal(next(keys), (kernel_size, cout, cout), jnp.float32),
            "b2": 0.01 * jax.random.normal(next(keys), (cout,), jnp.float32),
        }
        if cin != cout:
            blk["wd"] = 0.01 * jax.random.normal(next(keys), (cin, cout), jnp.float32)
            blk["bd"] = 0.01 * jax.random.normal(next(keys), (cout,), jnp.float32)
        else:
            blk["wd"], blk["bd"] = None, None
        blocks.append(blk)
        cin = cout
    H = hidden_dims[-1]
    return {
        "blocks": blocks,
        "att_w1": 0.05 * jax.random.normal(next(keys), (H, H // 2), jnp.float32),
        "att_b1": 0.05 * jax.random.normal(next(keys), (H // 2,), jnp.float32),
        "att_w2": 0.05 * jax.random.normal(next(keys), (H // 2, 1), jnp.float32),
        "att_b2": jnp.zeros((1,), jnp.float32),
        "out_w1": 0.05 * jax.random.normal(next(keys), (H, H // 2), jnp.float32),
        "out_b1": 0.05 * jax.random.normal(next(keys), (H // 2,), jnp.float32),
        "out_w2": 0.05 * jax.random.normal(next(keys), (H // 2, 1), jnp.float32),
        "out_b2": jnp.zeros((1,), jnp.float32),
    }


# ---------------------------------------------------------------------------
# Pure-JAX reference (mirrors the kernels' bf16 MXU operands / f32 accumulation
# for the matmuls; prefix softmax done per-timestep exactly like the PyTorch
# loop).
# ---------------------------------------------------------------------------
def ref_forward(x, params, mask=None):
    def mm(a, w):
        return jnp.dot(a.astype(jnp.bfloat16), w.astype(jnp.bfloat16),
                       preferred_element_type=jnp.float32)

    h = x
    for i, blk in enumerate(params["blocks"]):
        d = 2 ** i
        K = blk["w1"].shape[0]

        def conv(inp, w, b):
            S = inp.shape[1]
            out = jnp.zeros(inp.shape[:2] + (w.shape[2],), jnp.float32)
            for k in range(K):
                shift = (K - 1 - k) * d
                xs = inp if shift == 0 else jnp.pad(
                    inp, ((0, 0), (shift, 0), (0, 0)))[:, :S, :]
                out = out + mm(xs, w[k])
            return jax.nn.relu(out + b[None, None, :])

        h1 = conv(h, blk["w1"], blk["b1"])
        h2 = conv(h1, blk["w2"], blk["b2"])
        res = h if blk["wd"] is None else mm(h, blk["wd"]) + blk["bd"]
        h = jax.nn.relu(h2 + res)

    if mask is not None:
        h = h * mask[:, :, None].astype(h.dtype)

    a1 = jnp.tanh(mm(h, params["att_w1"]) + params["att_b1"])
    sc = (mm(a1, params["att_w2"]) + params["att_b2"])[..., 0]      # (B, S)
    if mask is not None:
        sc = jnp.where(mask == 0, -1e9, sc)

    B, S, H = h.shape
    outs = []
    for t in range(S):
        w_t = jax.nn.softmax(sc[:, :t + 1], axis=1)[..., None]
        outs.append(jnp.sum(h[:, :t + 1, :] * w_t, axis=1))
    comb = jnp.stack(outs, axis=1)

    o1 = jax.nn.relu(mm(comb, params["out_w1"]) + params["out_b1"])
    return jax.nn.sigmoid(mm(o1, params["out_w2"]) + params["out_b2"])


if __name__ == "__main__":
    key = jax.random.PRNGKey(0)
    k_x, k_p = jax.random.split(key)

    B, S, input_dim = 2, 16, 8
    hidden_dims = [16, 32, 32]      # small stand-in for [64, 128, 256, 512]
    kernel_size = 3

    x = jax.random.normal(k_x, (B, S, input_dim), dtype=jnp.float32)
    params = init_params(k_p, input_dim, hidden_dims, kernel_size)

    fwd = jax.jit(lambda xx: sepsis_tcn_forward(xx, params))
    out = jax.block_until_ready(fwd(x))

    assert out.shape == (B, S, 1)
    ref = ref_forward(x, params)
    np.testing.assert_allclose(np.asarray(out), np.asarray(ref),
                               atol=2e-3, rtol=2e-3)

    print("KERNEL_OK")
</pallas_src>

<mosaic_0001>
module attributes {stable_mosaic.version = 11 : i64} {
  func.func @kernel(%arg0: i32, %arg1: memref<1x16x8xf32, #tpu.memory_space<vmem>>, %arg2: memref<3x8x16xbf16, #tpu.memory_space<vmem>>, %arg3: memref<1x16xf32, #tpu.memory_space<vmem>>, %arg4: memref<3x16x16xbf16, #tpu.memory_space<vmem>>, %arg5: memref<1x16xf32, #tpu.memory_space<vmem>>, %arg6: memref<8x16xbf16, #tpu.memory_space<vmem>>, %arg7: memref<1x16xf32, #tpu.memory_space<vmem>>, %arg8: memref<3x16x32xbf16, #tpu.memory_space<vmem>>, %arg9: memref<1x32xf32, #tpu.memory_space<vmem>>, %arg10: memref<3x32x32xbf16, #tpu.memory_space<vmem>>, %arg11: memref<1x32xf32, #tpu.memory_space<vmem>>, %arg12: memref<16x32xbf16, #tpu.memory_space<vmem>>, %arg13: memref<1x32xf32, #tpu.memory_space<vmem>>, %arg14: memref<3x32x32xbf16, #tpu.memory_space<vmem>>, %arg15: memref<1x32xf32, #tpu.memory_space<vmem>>, %arg16: memref<3x32x32xbf16, #tpu.memory_space<vmem>>, %arg17: memref<1x32xf32, #tpu.memory_space<vmem>>, %arg18: memref<32x16xbf16, #tpu.memory_space<vmem>>, %arg19: memref<1x16xf32, #tpu.memory_space<vmem>>, %arg20: memref<16x1xbf16, #tpu.memory_space<vmem>>, %arg21: memref<1x1xf32, #tpu.memory_space<vmem>>, %arg22: memref<32x16xbf16, #tpu.memory_space<vmem>>, %arg23: memref<1x16xf32, #tpu.memory_space<vmem>>, %arg24: memref<16x1xbf16, #tpu.memory_space<vmem>>, %arg25: memref<1x1xf32, #tpu.memory_space<vmem>>, %arg26: memref<1x1x16xf32, #tpu.memory_space<vmem>>) attributes {dimension_semantics = [#tpu.dimension_semantics<parallel>], iteration_bounds = array<i64: 2>, scalar_prefetch = 0 : i64, scratch_operands = 0 : i64, tpu.core_type = #tpu.core_type<tc>, window_params = [{transform_indices = @transform_0, window_bounds = array<i64: 1, 16, 8>}, {pipeline_mode = #tpu.pipeline_mode<synchronous>, transform_indices = @transform_1, window_bounds = array<i64: 3, 8, 16>}, {pipeline_mode = #tpu.pipeline_mode<synchronous>, transform_indices = @transform_2, window_bounds = array<i64: 1, 16>}, {pipeline_mode = #tpu.pipeline_mode<synchronous>, transform_indices = @transform_3, window_bounds = array<i64: 3, 16, 16>}, {pipeline_mode = #tpu.pipeline_mode<synchronous>, transform_indices = @transform_4, window_bounds = array<i64: 1, 16>}, {pipeline_mode = #tpu.pipeline_mode<synchronous>, transform_indices = @transform_5, window_bounds = array<i64: 8, 16>}, {pipeline_mode = #tpu.pipeline_mode<synchronous>, transform_indices = @transform_6, window_bounds = array<i64: 1, 16>}, {pipeline_mode = #tpu.pipeline_mode<synchronous>, transform_indices = @transform_7, window_bounds = array<i64: 3, 16, 32>}, {pipeline_mode = #tpu.pipeline_mode<synchronous>, transform_indices = @transform_8, window_bounds = array<i64: 1, 32>}, {pipeline_mode = #tpu.pipeline_mode<synchronous>, transform_indices = @transform_9, window_bounds = array<i64: 3, 32, 32>}, {pipeline_mode = #tpu.pipeline_mode<synchronous>, transform_indices = @transform_10, window_bounds = array<i64: 1, 32>}, {pipeline_mode = #tpu.pipeline_mode<synchronous>, transform_indices = @transform_11, window_bounds = array<i64: 16, 32>}, {pipeline_mode = #tpu.pipeline_mode<synchronous>, transform_indices = @transform_12, window_bounds = array<i64: 1, 32>}, {pipeline_mode = #tpu.pipeline_mode<synchronous>, transform_indices = @transform_13, window_bounds = array<i64: 3, 32, 32>}, {pipeline_mode = #tpu.pipeline_mode<synchronous>, transform_indices = @transform_14, window_bounds = array<i64: 1, 32>}, {pipeline_mode = #tpu.pipeline_mode<synchronous>, transform_indices = @transform_15, window_bounds = array<i64: 3, 32, 32>}, {pipeline_mode = #tpu.pipeline_mode<synchronous>, transform_indices = @transform_16, window_bounds = array<i64: 1, 32>}, {pipeline_mode = #tpu.pipeline_mode<synchronous>, transform_indices = @transform_17, window_bounds = array<i64: 32, 16>}, {pipeline_mode = #tpu.pipeline_mode<synchronous>, transform_indices = @transform_18, window_bounds = array<i64: 1, 16>}, {pipeline_mode = #tpu.pipeline_mode<synchronous>, transform_indices = @transform_19, window_bounds = array<i64: 16, 1>}, {pipeline_mode = #tpu.pipeline_mode<synchronous>, transform_indices = @transform_20, window_bounds = array<i64: 1, 1>}, {pipeline_mode = #tpu.pipeline_mode<synchronous>, transform_indices = @transform_21, window_bounds = array<i64: 32, 16>}, {pipeline_mode = #tpu.pipeline_mode<synchronous>, transform_indices = @transform_22, window_bounds = array<i64: 1, 16>}, {pipeline_mode = #tpu.pipeline_mode<synchronous>, transform_indices = @transform_23, window_bounds = array<i64: 16, 1>}, {pipeline_mode = #tpu.pipeline_mode<synchronous>, transform_indices = @transform_24, window_bounds = array<i64: 1, 1>}, {transform_indices = @transform_25, window_bounds = array<i64: 1, 1, 16>}]} {
    %0 = tpu.iota {dimensions = array<i32: 0>} : vector<16x1xi32>
    %c0 = arith.constant 0 : index
    %c0_0 = arith.constant 0 : index
    %c0_1 = arith.constant 0 : index
    %1 = vector.load %arg1[%c0, %c0_0, %c0_1] : memref<1x16x8xf32, #tpu.memory_space<vmem>>, vector<1x16x8xf32>
    %2 = vector.shape_cast %1 : vector<1x16x8xf32> to vector<16x8xf32>
    %c2_i32 = arith.constant 2 : i32
    %3 = tpu.dynamic_rotate %2 by %c2_i32 dim 0 : vector<16x8xf32>, i32 -> vector<16x8xf32>
    %c2_i32_2 = arith.constant 2 : i32
    %4 = vector.broadcast %c2_i32_2 : i32 to vector<16x1xi32>
    %5 = arith.cmpi sge, %0, %4 : vector<16x1xi32>
    %cst = arith.constant 0.000000e+00 : f32
    %6 = vector.broadcast %cst : f32 to vector<16x8xf32>
    %7 = vector.shape_cast %5 : vector<16x1xi1> to vector<16x1xi1>
    %8 = vector.broadcast %7 : vector<16x1xi1> to vector<16x8xi1>
    %9 = arith.select %8, %3, %6 : vector<16x8xi1>, vector<16x8xf32>
    %10 = arith.truncf %9 : vector<16x8xf32> to vector<16x8xbf16>
    %c0_3 = arith.constant 0 : index
    %c0_4 = arith.constant 0 : index
    %c0_5 = arith.constant 0 : index
    %11 = vector.load %arg2[%c0_3, %c0_4, %c0_5] : memref<3x8x16xbf16, #tpu.memory_space<vmem>>, vector<1x8x16xbf16>
    %12 = vector.shape_cast %11 : vector<1x8x16xbf16> to vector<8x16xbf16>
    %cst_6 = arith.constant dense<0.000000e+00> : vector<16x16xf32>
    %13 = tpu.matmul %10, %12, %cst_6 {dimension_numbers = #tpu.dot_dimension_numbers<[1], [0], [0], [1], [0, 0, 1, 1], [], []>} : vector<16x8xbf16>, vector<8x16xbf16>, vector<16x16xf32> -> vector<16x16xf32>
    %c1_i32 = arith.constant 1 : i32
    %14 = tpu.dynamic_rotate %2 by %c1_i32 dim 0 : vector<16x8xf32>, i32 -> vector<16x8xf32>
    %c1_i32_7 = arith.constant 1 : i32
    %15 = vector.broadcast %c1_i32_7 : i32 to vector<16x1xi32>
    %16 = arith.cmpi sge, %0, %15 : vector<16x1xi32>
    %cst_8 = arith.constant 0.000000e+00 : f32
    %17 = vector.broadcast %cst_8 : f32 to vector<16x8xf32>
    %18 = vector.shape_cast %16 : vector<16x1xi1> to vector<16x1xi1>
    %19 = vector.broadcast %18 : vector<16x1xi1> to vector<16x8xi1>
    %20 = arith.select %19, %14, %17 : vector<16x8xi1>, vector<16x8xf32>
    %21 = arith.truncf %20 : vector<16x8xf32> to vector<16x8xbf16>
    %c1 = arith.constant 1 : index
    %c0_9 = arith.constant 0 : index
    %c0_10 = arith.constant 0 : index
    %22 = vector.load %arg2[%c1, %c0_9, %c0_10] : memref<3x8x16xbf16, #tpu.memory_space<vmem>>, vector<1x8x16xbf16>
    %23 = vector.shape_cast %22 : vector<1x8x16xbf16> to vector<8x16xbf16>
    %cst_11 = arith.constant dense<0.000000e+00> : vector<16x16xf32>
    %24 = tpu.matmul %21, %23, %cst_11 {dimension_numbers = #tpu.dot_dimension_numbers<[1], [0], [0], [1], [0, 0, 1, 1], [], []>} : vector<16x8xbf16>, vector<8x16xbf16>, vector<16x16xf32> -> vector<16x16xf32>
    %25 = arith.addf %13, %24 : vector<16x16xf32>
    %26 = arith.truncf %2 : vector<16x8xf32> to vector<16x8xbf16>
    %c2 = arith.constant 2 : index
    %c0_12 = arith.constant 0 : index
    %c0_13 = arith.constant 0 : index
    %27 = vector.load %arg2[%c2, %c0_12, %c0_13] : memref<3x8x16xbf16, #tpu.memory_space<vmem>>, vector<1x8x16xbf16>
    %28 = vector.shape_cast %27 : vector<1x8x16xbf16> to vector<8x16xbf16>
    %cst_14 = arith.constant dense<0.000000e+00> : vector<16x16xf32>
    %29 = tpu.matmul %26, %28, %cst_14 {dimension_numbers = #tpu.dot_dimension_numbers<[1], [0], [0], [1], [0, 0, 1, 1], [], []>} : vector<16x8xbf16>, vector<8x16xbf16>, vector<16x16xf32> -> vector<16x16xf32>
    %30 = arith.addf %25, %29 : vector<16x16xf32>
    %c0_15 = arith.constant 0 : index
    %c0_16 = arith.constant 0 : index
    %31 = vector.load %arg3[%c0_15, %c0_16] : memref<1x16xf32, #tpu.memory_space<vmem>>, vector<1x16xf32>
    %32 = vector.broadcast %31 : vector<1x16xf32> to vector<16x16xf32>
    %33 = arith.addf %30, %32 : vector<16x16xf32>
    %cst_17 = arith.constant 0.000000e+00 : f32
    %34 = vector.broadcast %cst_17 : f32 to vector<16x16xf32>
    %35 = arith.maximumf %33, %34 : vector<16x16xf32>
    %c2_i32_18 = arith.constant 2 : i32
    %36 = tpu.dynamic_rotate %35 by %c2_i32_18 dim 0 : vector<16x16xf32>, i32 -> vector<16x16xf32>
    %c2_i32_19 = arith.constant 2 : i32
    %37 = vector.broadcast %c2_i32_19 : i32 to vector<16x1xi32>
    %38 = arith.cmpi sge, %0, %37 : vector<16x1xi32>
    %cst_20 = arith.constant 0.000000e+00 : f32
    %39 = vector.broadcast %cst_20 : f32 to vector<16x16xf32>
    %40 = vector.shape_cast %38 : vector<16x1xi1> to vector<16x1xi1>
    %41 = vector.broadcast %40 : vector<16x1xi1> to vector<16x16xi1>
    %42 = arith.select %41, %36, %39 : vector<16x16xi1>, vector<16x16xf32>
    %43 = arith.truncf %42 : vector<16x16xf32> to vector<16x16xbf16>
    %c0_21 = arith.constant 0 : index
    %c0_22 = arith.constant 0 : index
    %c0_23 = arith.constant 0 : index
    %44 = vector.load %arg4[%c0_21, %c0_22, %c0_23] : memref<3x16x16xbf16, #tpu.memory_space<vmem>>, vector<1x16x16xbf16>
    %45 = vector.shape_cast %44 : vector<1x16x16xbf16> to vector<16x16xbf16>
    %cst_24 = arith.constant dense<0.000000e+00> : vector<16x16xf32>
    %46 = tpu.matmul %43, %45, %cst_24 {dimension_numbers = #tpu.dot_dimension_numbers<[1], [0], [0], [1], [0, 0, 1, 1], [], []>} : vector<16x16xbf16>, vector<16x16xbf16>, vector<16x16xf32> -> vector<16x16xf32>
    %c1_i32_25 = arith.constant 1 : i32
    %47 = tpu.dynamic_rotate %35 by %c1_i32_25 dim 0 : vector<16x16xf32>, i32 -> vector<16x16xf32>
    %c1_i32_26 = arith.constant 1 : i32
    %48 = vector.broadcast %c1_i32_26 : i32 to vector<16x1xi32>
    %49 = arith.cmpi sge, %0, %48 : vector<16x1xi32>
    %cst_27 = arith.constant 0.000000e+00 : f32
    %50 = vector.broadcast %cst_27 : f32 to vector<16x16xf32>
    %51 = vector.shape_cast %49 : vector<16x1xi1> to vector<16x1xi1>
    %52 = vector.broadcast %51 : vector<16x1xi1> to vector<16x16xi1>
    %53 = arith.select %52, %47, %50 : vector<16x16xi1>, vector<16x16xf32>
    %54 = arith.truncf %53 : vector<16x16xf32> to vector<16x16xbf16>
    %c1_28 = arith.constant 1 : index
    %c0_29 = arith.constant 0 : index
    %c0_30 = arith.constant 0 : index
    %55 = vector.load %arg4[%c1_28, %c0_29, %c0_30] : memref<3x16x16xbf16, #tpu.memory_space<vmem>>, vector<1x16x16xbf16>
    %56 = vector.shape_cast %55 : vector<1x16x16xbf16> to vector<16x16xbf16>
    %cst_31 = arith.constant dense<0.000000e+00> : vector<16x16xf32>
    %57 = tpu.matmul %54, %56, %cst_31 {dimension_numbers = #tpu.dot_dimension_numbers<[1], [0], [0], [1], [0, 0, 1, 1], [], []>} : vector<16x16xbf16>, vector<16x16xbf16>, vector<16x16xf32> -> vector<16x16xf32>
    %58 = arith.addf %46, %57 : vector<16x16xf32>
    %59 = arith.truncf %35 : vector<16x16xf32> to vector<16x16xbf16>
    %c2_32 = arith.constant 2 : index
    %c0_33 = arith.constant 0 : index
    %c0_34 = arith.constant 0 : index
    %60 = vector.load %arg4[%c2_32, %c0_33, %c0_34] : memref<3x16x16xbf16, #tpu.memory_space<vmem>>, vector<1x16x16xbf16>
    %61 = vector.shape_cast %60 : vector<1x16x16xbf16> to vector<16x16xbf16>
    %cst_35 = arith.constant dense<0.000000e+00> : vector<16x16xf32>
    %62 = tpu.matmul %59, %61, %cst_35 {dimension_numbers = #tpu.dot_dimension_numbers<[1], [0], [0], [1], [0, 0, 1, 1], [], []>} : vector<16x16xbf16>, vector<16x16xbf16>, vector<16x16xf32> -> vector<16x16xf32>
    %63 = arith.addf %58, %62 : vector<16x16xf32>
    %c0_36 = arith.constant 0 : index
    %c0_37 = arith.constant 0 : index
    %64 = vector.load %arg5[%c0_36, %c0_37] : memref<1x16xf32, #tpu.memory_space<vmem>>, vector<1x16xf32>
    %65 = vector.broadcast %64 : vector<1x16xf32> to vector<16x16xf32>
    %66 = arith.addf %63, %65 : vector<16x16xf32>
    %cst_38 = arith.constant 0.000000e+00 : f32
    %67 = vector.broadcast %cst_38 : f32 to vector<16x16xf32>
    %68 = arith.maximumf %66, %67 : vector<16x16xf32>
    %69 = arith.truncf %2 : vector<16x8xf32> to vector<16x8xbf16>
    %c0_39 = arith.constant 0 : index
    %c0_40 = arith.constant 0 : index
    %70 = vector.load %arg6[%c0_39, %c0_40] : memref<8x16xbf16, #tpu.memory_space<vmem>>, vector<8x16xbf16>
    %cst_41 = arith.constant dense<0.000000e+00> : vector<16x16xf32>
    %71 = tpu.matmul %69, %70, %cst_41 {dimension_numbers = #tpu.dot_dimension_numbers<[1], [0], [0], [1], [0, 0, 1, 1], [], []>} : vector<16x8xbf16>, vector<8x16xbf16>, vector<16x16xf32> -> vector<16x16xf32>
    %c0_42 = arith.constant 0 : index
    %c0_43 = arith.constant 0 : index
    %72 = vector.load %arg7[%c0_42, %c0_43] : memref<1x16xf32, #tpu.memory_space<vmem>>, vector<1x16xf32>
    %73 = vector.broadcast %72 : vector<1x16xf32> to vector<16x16xf32>
    %74 = arith.addf %71, %73 : vector<16x16xf32>
    %75 = arith.addf %68, %74 : vector<16x16xf32>
    %cst_44 = arith.constant 0.000000e+00 : f32
    %76 = vector.broadcast %cst_44 : f32 to vector<16x16xf32>
    %77 = arith.maximumf %75, %76 : vector<16x16xf32>
    %c4_i32 = arith.constant 4 : i32
    %78 = tpu.dynamic_rotate %77 by %c4_i32 dim 0 : vector<16x16xf32>, i32 -> vector<16x16xf32>
    %c4_i32_45 = arith.constant 4 : i32
    %79 = vector.broadcast %c4_i32_45 : i32 to vector<16x1xi32>
    %80 = arith.cmpi sge, %0, %79 : vector<16x1xi32>
    %cst_46 = arith.constant 0.000000e+00 : f32
    %81 = vector.broadcast %cst_46 : f32 to vector<16x16xf32>
    %82 = vector.shape_cast %80 : vector<16x1xi1> to vector<16x1xi1>
    %83 = vector.broadcast %82 : vector<16x1xi1> to vector<16x16xi1>
    %84 = arith.select %83, %78, %81 : vector<16x16xi1>, vector<16x16xf32>
    %85 = arith.truncf %84 : vector<16x16xf32> to vector<16x16xbf16>
    %c0_47 = arith.constant 0 : index
    %c0_48 = arith.constant 0 : index
    %c0_49 = arith.constant 0 : index
    %86 = vector.load %arg8[%c0_47, %c0_48, %c0_49] : memref<3x16x32xbf16, #tpu.memory_space<vmem>>, vector<1x16x32xbf16>
    %87 = vector.shape_cast %86 : vector<1x16x32xbf16> to vector<16x32xbf16>
    %cst_50 = arith.constant dense<0.000000e+00> : vector<16x32xf32>
    %88 = tpu.matmul %85, %87, %cst_50 {dimension_numbers = #tpu.dot_dimension_numbers<[1], [0], [0], [1], [0, 0, 1, 1], [], []>} : vector<16x16xbf16>, vector<16x32xbf16>, vector<16x32xf32> -> vector<16x32xf32>
    %c2_i32_51 = arith.constant 2 : i32
    %89 = tpu.dynamic_rotate %77 by %c2_i32_51 dim 0 : vector<16x16xf32>, i32 -> vector<16x16xf32>
    %c2_i32_52 = arith.constant 2 : i32
    %90 = vector.broadcast %c2_i32_52 : i32 to vector<16x1xi32>
    %91 = arith.cmpi sge, %0, %90 : vector<16x1xi32>
    %cst_53 = arith.constant 0.000000e+00 : f32
    %92 = vector.broadcast %cst_53 : f32 to vector<16x16xf32>
    %93 = vector.shape_cast %91 : vector<16x1xi1> to vector<16x1xi1>
    %94 = vector.broadcast %93 : vector<16x1xi1> to vector<16x16xi1>
    %95 = arith.select %94, %89, %92 : vector<16x16xi1>, vector<16x16xf32>
    %96 = arith.truncf %95 : vector<16x16xf32> to vector<16x16xbf16>
    %c1_54 = arith.constant 1 : index
    %c0_55 = arith.constant 0 : index
    %c0_56 = arith.constant 0 : index
    %97 = vector.load %arg8[%c1_54, %c0_55, %c0_56] : memref<3x16x32xbf16, #tpu.memory_space<vmem>>, vector<1x16x32xbf16>
    %98 = vector.shape_cast %97 : vector<1x16x32xbf16> to vector<16x32xbf16>
    %cst_57 = arith.constant dense<0.000000e+00> : vector<16x32xf32>
    %99 = tpu.matmul %96, %98, %cst_57 {dimension_numbers = #tpu.dot_dimension_numbers<[1], [0], [0], [1], [0, 0, 1, 1], [], []>} : vector<16x16xbf16>, vector<16x32xbf16>, vector<16x32xf32> -> vector<16x32xf32>
    %100 = arith.addf %88, %99 : vector<16x32xf32>
    %101 = arith.truncf %77 : vector<16x16xf32> to vector<16x16xbf16>
    %c2_58 = arith.constant 2 : index
    %c0_59 = arith.constant 0 : index
    %c0_60 = arith.constant 0 : index
    %102 = vector.load %arg8[%c2_58, %c0_59, %c0_60] : memref<3x16x32xbf16, #tpu.memory_space<vmem>>, vector<1x16x32xbf16>
    %103 = vector.shape_cast %102 : vector<1x16x32xbf16> to vector<16x32xbf16>
    %cst_61 = arith.constant dense<0.000000e+00> : vector<16x32xf32>
    %104 = tpu.matmul %101, %103, %cst_61 {dimension_numbers = #tpu.dot_dimension_numbers<[1], [0], [0], [1], [0, 0, 1, 1], [], []>} : vector<16x16xbf16>, vector<16x32xbf16>, vector<16x32xf32> -> vector<16x32xf32>
    %105 = arith.addf %100, %104 : vector<16x32xf32>
    %c0_62 = arith.constant 0 : index
    %c0_63 = arith.constant 0 : index
    %106 = vector.load %arg9[%c0_62, %c0_63] : memref<1x32xf32, #tpu.memory_space<vmem>>, vector<1x32xf32>
    %107 = vector.broadcast %106 : vector<1x32xf32> to vector<16x32xf32>
    %108 = arith.addf %105, %107 : vector<16x32xf32>
    %cst_64 = arith.constant 0.000000e+00 : f32
    %109 = vector.broadcast %cst_64 : f32 to vector<16x32xf32>
    %110 = arith.maximumf %108, %109 : vector<16x32xf32>
    %c4_i32_65 = arith.constant 4 : i32
    %111 = tpu.dynamic_rotate %110 by %c4_i32_65 dim 0 : vector<16x32xf32>, i32 -> vector<16x32xf32>
    %c4_i32_66 = arith.constant 4 : i32
    %112 = vector.broadcast %c4_i32_66 : i32 to vector<16x1xi32>
    %113 = arith.cmpi sge, %0, %112 : vector<16x1xi32>
    %cst_67 = arith.constant 0.000000e+00 : f32
    %114 = vector.broadcast %cst_67 : f32 to vector<16x32xf32>
    %115 = vector.shape_cast %113 : vector<16x1xi1> to vector<16x1xi1>
    %116 = vector.broadcast %115 : vector<16x1xi1> to vector<16x32xi1>
    %117 = arith.select %116, %111, %114 : vector<16x32xi1>, vector<16x32xf32>
    %118 = arith.truncf %117 : vector<16x32xf32> to vector<16x32xbf16>
    %c0_68 = arith.constant 0 : index
    %c0_69 = arith.constant 0 : index
    %c0_70 = arith.constant 0 : index
    %119 = vector.load %arg10[%c0_68, %c0_69, %c0_70] : memref<3x32x32xbf16, #tpu.memory_space<vmem>>, vector<1x32x32xbf16>
    %120 = vector.shape_cast %119 : vector<1x32x32xbf16> to vector<32x32xbf16>
    %cst_71 = arith.constant dense<0.000000e+00> : vector<16x32xf32>
    %121 = tpu.matmul %118, %120, %cst_71 {dimension_numbers = #tpu.dot_dimension_numbers<[1], [0], [0], [1], [0, 0, 1, 1], [], []>} : vector<16x32xbf16>, vector<32x32xbf16>, vector<16x32xf32> -> vector<16x32xf32>
    %c2_i32_72 = arith.constant 2 : i32
    %122 = tpu.dynamic_rotate %110 by %c2_i32_72 dim 0 : vector<16x32xf32>, i32 -> vector<16x32xf32>
    %c2_i32_73 = arith.constant 2 : i32
    %123 = vector.broadcast %c2_i32_73 : i32 to vector<16x1xi32>
    %124 = arith.cmpi sge, %0, %123 : vector<16x1xi32>
    %cst_74 = arith.constant 0.000000e+00 : f32
    %125 = vector.broadcast %cst_74 : f32 to vector<16x32xf32>
    %126 = vector.shape_cast %124 : vector<16x1xi1> to vector<16x1xi1>
    %127 = vector.broadcast %126 : vector<16x1xi1> to vector<16x32xi1>
    %128 = arith.select %127, %122, %125 : vector<16x32xi1>, vector<16x32xf32>
    %129 = arith.truncf %128 : vector<16x32xf32> to vector<16x32xbf16>
    %c1_75 = arith.constant 1 : index
    %c0_76 = arith.constant 0 : index
    %c0_77 = arith.constant 0 : index
    %130 = vector.load %arg10[%c1_75, %c0_76, %c0_77] : memref<3x32x32xbf16, #tpu.memory_space<vmem>>, vector<1x32x32xbf16>
    %131 = vector.shape_cast %130 : vector<1x32x32xbf16> to vector<32x32xbf16>
    %cst_78 = arith.constant dense<0.000000e+00> : vector<16x32xf32>
    %132 = tpu.matmul %129, %131, %cst_78 {dimension_numbers = #tpu.dot_dimension_numbers<[1], [0], [0], [1], [0, 0, 1, 1], [], []>} : vector<16x32xbf16>, vector<32x32xbf16>, vector<16x32xf32> -> vector<16x32xf32>
    %133 = arith.addf %121, %132 : vector<16x32xf32>
    %134 = arith.truncf %110 : vector<16x32xf32> to vector<16x32xbf16>
    %c2_79 = arith.constant 2 : index
    %c0_80 = arith.constant 0 : index
    %c0_81 = arith.constant 0 : index
    %135 = vector.load %arg10[%c2_79, %c0_80, %c0_81] : memref<3x32x32xbf16, #tpu.memory_space<vmem>>, vector<1x32x32xbf16>
    %136 = vector.shape_cast %135 : vector<1x32x32xbf16> to vector<32x32xbf16>
    %cst_82 = arith.constant dense<0.000000e+00> : vector<16x32xf32>
    %137 = tpu.matmul %134, %136, %cst_82 {dimension_numbers = #tpu.dot_dimension_numbers<[1], [0], [0], [1], [0, 0, 1, 1], [], []>} : vector<16x32xbf16>, vector<32x32xbf16>, vector<16x32xf32> -> vector<16x32xf32>
    %138 = arith.addf %133, %137 : vector<16x32xf32>
    %c0_83 = arith.constant 0 : index
    %c0_84 = arith.constant 0 : index
    %139 = vector.load %arg11[%c0_83, %c0_84] : memref<1x32xf32, #tpu.memory_space<vmem>>, vector<1x32xf32>
    %140 = vector.broadcast %139 : vector<1x32xf32> to vector<16x32xf32>
    %141 = arith.addf %138, %140 : vector<16x32xf32>
    %cst_85 = arith.constant 0.000000e+00 : f32
    %142 = vector.broadcast %cst_85 : f32 to vector<16x32xf32>
    %143 = arith.maximumf %141, %142 : vector<16x32xf32>
    %144 = arith.truncf %77 : vector<16x16xf32> to vector<16x16xbf16>
    %c0_86 = arith.constant 0 : index
    %c0_87 = arith.constant 0 : index
    %145 = vector.load %arg12[%c0_86, %c0_87] : memref<16x32xbf16, #tpu.memory_space<vmem>>, vector<16x32xbf16>
    %cst_88 = arith.constant dense<0.000000e+00> : vector<16x32xf32>
    %146 = tpu.matmul %144, %145, %cst_88 {dimension_numbers = #tpu.dot_dimension_numbers<[1], [0], [0], [1], [0, 0, 1, 1], [], []>} : vector<16x16xbf16>, vector<16x32xbf16>, vector<16x32xf32> -> vector<16x32xf32>
    %c0_89 = arith.constant 0 : index
    %c0_90 = arith.constant 0 : index
    %147 = vector.load %arg13[%c0_89, %c0_90] : memref<1x32xf32, #tpu.memory_space<vmem>>, vector<1x32xf32>
    %148 = vector.broadcast %147 : vector<1x32xf32> to vector<16x32xf32>
    %149 = arith.addf %146, %148 : vector<16x32xf32>
    %150 = arith.addf %143, %149 : vector<16x32xf32>
    %cst_91 = arith.constant 0.000000e+00 : f32
    %151 = vector.broadcast %cst_91 : f32 to vector<16x32xf32>
    %152 = arith.maximumf %150, %151 : vector<16x32xf32>
    %c8_i32 = arith.constant 8 : i32
    %153 = tpu.dynamic_rotate %152 by %c8_i32 dim 0 : vector<16x32xf32>, i32 -> vector<16x32xf32>
    %c8_i32_92 = arith.constant 8 : i32
    %154 = vector.broadcast %c8_i32_92 : i32 to vector<16x1xi32>
    %155 = arith.cmpi sge, %0, %154 : vector<16x1xi32>
    %cst_93 = arith.constant 0.000000e+00 : f32
    %156 = vector.broadcast %cst_93 : f32 to vector<16x32xf32>
    %157 = vector.shape_cast %155 : vector<16x1xi1> to vector<16x1xi1>
    %158 = vector.broadcast %157 : vector<16x1xi1> to vector<16x32xi1>
    %159 = arith.select %158, %153, %156 : vector<16x32xi1>, vector<16x32xf32>
    %160 = arith.truncf %159 : vector<16x32xf32> to vector<16x32xbf16>
    %c0_94 = arith.constant 0 : index
    %c0_95 = arith.constant 0 : index
    %c0_96 = arith.constant 0 : index
    %161 = vector.load %arg14[%c0_94, %c0_95, %c0_96] : memref<3x32x32xbf16, #tpu.memory_space<vmem>>, vector<1x32x32xbf16>
    %162 = vector.shape_cast %161 : vector<1x32x32xbf16> to vector<32x32xbf16>
    %cst_97 = arith.constant dense<0.000000e+00> : vector<16x32xf32>
    %163 = tpu.matmul %160, %162, %cst_97 {dimension_numbers = #tpu.dot_dimension_numbers<[1], [0], [0], [1], [0, 0, 1, 1], [], []>} : vector<16x32xbf16>, vector<32x32xbf16>, vector<16x32xf32> -> vector<16x32xf32>
    %c4_i32_98 = arith.constant 4 : i32
    %164 = tpu.dynamic_rotate %152 by %c4_i32_98 dim 0 : vector<16x32xf32>, i32 -> vector<16x32xf32>
    %c4_i32_99 = arith.constant 4 : i32
    %165 = vector.broadcast %c4_i32_99 : i32 to vector<16x1xi32>
    %166 = arith.cmpi sge, %0, %165 : vector<16x1xi32>
    %cst_100 = arith.constant 0.000000e+00 : f32
    %167 = vector.broadcast %cst_100 : f32 to vector<16x32xf32>
    %168 = vector.shape_cast %166 : vector<16x1xi1> to vector<16x1xi1>
    %169 = vector.broadcast %168 : vector<16x1xi1> to vector<16x32xi1>
    %170 = arith.select %169, %164, %167 : vector<16x32xi1>, vector<16x32xf32>
    %171 = arith.truncf %170 : vector<16x32xf32> to vector<16x32xbf16>
    %c1_101 = arith.constant 1 : index
    %c0_102 = arith.constant 0 : index
    %c0_103 = arith.constant 0 : index
    %172 = vector.load %arg14[%c1_101, %c0_102, %c0_103] : memref<3x32x32xbf16, #tpu.memory_space<vmem>>, vector<1x32x32xbf16>
    %173 = vector.shape_cast %172 : vector<1x32x32xbf16> to vector<32x32xbf16>
    %cst_104 = arith.constant dense<0.000000e+00> : vector<16x32xf32>
    %174 = tpu.matmul %171, %173, %cst_104 {dimension_numbers = #tpu.dot_dimension_numbers<[1], [0], [0], [1], [0, 0, 1, 1], [], []>} : vector<16x32xbf16>, vector<32x32xbf16>, vector<16x32xf32> -> vector<16x32xf32>
    %175 = arith.addf %163, %174 : vector<16x32xf32>
    %176 = arith.truncf %152 : vector<16x32xf32> to vector<16x32xbf16>
    %c2_105 = arith.constant 2 : index
    %c0_106 = arith.constant 0 : index
    %c0_107 = arith.constant 0 : index
    %177 = vector.load %arg14[%c2_105, %c0_106, %c0_107] : memref<3x32x32xbf16, #tpu.memory_space<vmem>>, vector<1x32x32xbf16>
    %178 = vector.shape_cast %177 : vector<1x32x32xbf16> to vector<32x32xbf16>
    %cst_108 = arith.constant dense<0.000000e+00> : vector<16x32xf32>
    %179 = tpu.matmul %176, %178, %cst_108 {dimension_numbers = #tpu.dot_dimension_numbers<[1], [0], [0], [1], [0, 0, 1, 1], [], []>} : vector<16x32xbf16>, vector<32x32xbf16>, vector<16x32xf32> -> vector<16x32xf32>
    %180 = arith.addf %175, %179 : vector<16x32xf32>
    %c0_109 = arith.constant 0 : index
    %c0_110 = arith.constant 0 : index
    %181 = vector.load %arg15[%c0_109, %c0_110] : memref<1x32xf32, #tpu.memory_space<vmem>>, vector<1x32xf32>
    %182 = vector.broadcast %181 : vector<1x32xf32> to vector<16x32xf32>
    %183 = arith.addf %180, %182 : vector<16x32xf32>
    %cst_111 = arith.constant 0.000000e+00 : f32
    %184 = vector.broadcast %cst_111 : f32 to vector<16x32xf32>
    %185 = arith.maximumf %183, %184 : vector<16x32xf32>
    %c8_i32_112 = arith.constant 8 : i32
    %186 = tpu.dynamic_rotate %185 by %c8_i32_112 dim 0 : vector<16x32xf32>, i32 -> vector<16x32xf32>
    %c8_i32_113 = arith.constant 8 : i32
    %187 = vector.broadcast %c8_i32_113 : i32 to vector<16x1xi32>
    %188 = arith.cmpi sge, %0, %187 : vector<16x1xi32>
    %cst_114 = arith.constant 0.000000e+00 : f32
    %189 = vector.broadcast %cst_114 : f32 to vector<16x32xf32>
    %190 = vector.shape_cast %188 : vector<16x1xi1> to vector<16x1xi1>
    %191 = vector.broadcast %190 : vector<16x1xi1> to vector<16x32xi1>
    %192 = arith.select %191, %186, %189 : vector<16x32xi1>, vector<16x32xf32>
    %193 = arith.truncf %192 : vector<16x32xf32> to vector<16x32xbf16>
    %c0_115 = arith.constant 0 : index
    %c0_116 = arith.constant 0 : index
    %c0_117 = arith.constant 0 : index
    %194 = vector.load %arg16[%c0_115, %c0_116, %c0_117] : memref<3x32x32xbf16, #tpu.memory_space<vmem>>, vector<1x32x32xbf16>
    %195 = vector.shape_cast %194 : vector<1x32x32xbf16> to vector<32x32xbf16>
    %cst_118 = arith.constant dense<0.000000e+00> : vector<16x32xf32>
    %196 = tpu.matmul %193, %195, %cst_118 {dimension_numbers = #tpu.dot_dimension_numbers<[1], [0], [0], [1], [0, 0, 1, 1], [], []>} : vector<16x32xbf16>, vector<32x32xbf16>, vector<16x32xf32> -> vector<16x32xf32>
    %c4_i32_119 = arith.constant 4 : i32
    %197 = tpu.dynamic_rotate %185 by %c4_i32_119 dim 0 : vector<16x32xf32>, i32 -> vector<16x32xf32>
    %c4_i32_120 = arith.constant 4 : i32
    %198 = vector.broadcast %c4_i32_120 : i32 to vector<16x1xi32>
    %199 = arith.cmpi sge, %0, %198 : vector<16x1xi32>
    %cst_121 = arith.constant 0.000000e+00 : f32
    %200 = vector.broadcast %cst_121 : f32 to vector<16x32xf32>
    %201 = vector.shape_cast %199 : vector<16x1xi1> to vector<16x1xi1>
    %202 = vector.broadcast %201 : vector<16x1xi1> to vector<16x32xi1>
    %203 = arith.select %202, %197, %200 : vector<16x32xi1>, vector<16x32xf32>
    %204 = arith.truncf %203 : vector<16x32xf32> to vector<16x32xbf16>
    %c1_122 = arith.constant 1 : index
    %c0_123 = arith.constant 0 : index
    %c0_124 = arith.constant 0 : index
    %205 = vector.load %arg16[%c1_122, %c0_123, %c0_124] : memref<3x32x32xbf16, #tpu.memory_space<vmem>>, vector<1x32x32xbf16>
    %206 = vector.shape_cast %205 : vector<1x32x32xbf16> to vector<32x32xbf16>
    %cst_125 = arith.constant dense<0.000000e+00> : vector<16x32xf32>
    %207 = tpu.matmul %204, %206, %cst_125 {dimension_numbers = #tpu.dot_dimension_numbers<[1], [0], [0], [1], [0, 0, 1, 1], [], []>} : vector<16x32xbf16>, vector<32x32xbf16>, vector<16x32xf32> -> vector<16x32xf32>
    %208 = arith.addf %196, %207 : vector<16x32xf32>
    %209 = arith.truncf %185 : vector<16x32xf32> to vector<16x32xbf16>
    %c2_126 = arith.constant 2 : index
    %c0_127 = arith.constant 0 : index
    %c0_128 = arith.constant 0 : index
    %210 = vector.load %arg16[%c2_126, %c0_127, %c0_128] : memref<3x32x32xbf16, #tpu.memory_space<vmem>>, vector<1x32x32xbf16>
    %211 = vector.shape_cast %210 : vector<1x32x32xbf16> to vector<32x32xbf16>
    %cst_129 = arith.constant dense<0.000000e+00> : vector<16x32xf32>
    %212 = tpu.matmul %209, %211, %cst_129 {dimension_numbers = #tpu.dot_dimension_numbers<[1], [0], [0], [1], [0, 0, 1, 1], [], []>} : vector<16x32xbf16>, vector<32x32xbf16>, vector<16x32xf32> -> vector<16x32xf32>
    %213 = arith.addf %208, %212 : vector<16x32xf32>
    %c0_130 = arith.constant 0 : index
    %c0_131 = arith.constant 0 : index
    %214 = vector.load %arg17[%c0_130, %c0_131] : memref<1x32xf32, #tpu.memory_space<vmem>>, vector<1x32xf32>
    %215 = vector.broadcast %214 : vector<1x32xf32> to vector<16x32xf32>
    %216 = arith.addf %213, %215 : vector<16x32xf32>
    %cst_132 = arith.constant 0.000000e+00 : f32
    %217 = vector.broadcast %cst_132 : f32 to vector<16x32xf32>
    %218 = arith.maximumf %216, %217 : vector<16x32xf32>
    %219 = arith.addf %218, %152 : vector<16x32xf32>
    %cst_133 = arith.constant 0.000000e+00 : f32
    %220 = vector.broadcast %cst_133 : f32 to vector<16x32xf32>
    %221 = arith.maximumf %219, %220 : vector<16x32xf32>
    %222 = arith.truncf %221 : vector<16x32xf32> to vector<16x32xbf16>
    %c0_134 = arith.constant 0 : index
    %c0_135 = arith.constant 0 : index
    %223 = vector.load %arg18[%c0_134, %c0_135] : memref<32x16xbf16, #tpu.memory_space<vmem>>, vector<32x16xbf16>
    %cst_136 = arith.constant dense<0.000000e+00> : vector<16x16xf32>
    %224 = tpu.matmul %222, %223, %cst_136 {dimension_numbers = #tpu.dot_dimension_numbers<[1], [0], [0], [1], [0, 0, 1, 1], [], []>} : vector<16x32xbf16>, vector<32x16xbf16>, vector<16x16xf32> -> vector<16x16xf32>
    %c0_137 = arith.constant 0 : index
    %c0_138 = arith.constant 0 : index
    %225 = vector.load %arg19[%c0_137, %c0_138] : memref<1x16xf32, #tpu.memory_space<vmem>>, vector<1x16xf32>
    %226 = vector.broadcast %225 : vector<1x16xf32> to vector<16x16xf32>
    %227 = arith.addf %224, %226 : vector<16x16xf32>
    %228 = math.tanh %227 : vector<16x16xf32>
    %229 = arith.truncf %228 : vector<16x16xf32> to vector<16x16xbf16>
    %c0_139 = arith.constant 0 : index
    %c0_140 = arith.constant 0 : index
    %230 = vector.load %arg20[%c0_139, %c0_140] : memref<16x1xbf16, #tpu.memory_space<vmem>>, vector<16x1xbf16>
    %cst_141 = arith.constant dense<0.000000e+00> : vector<16x1xf32>
    %231 = tpu.matmul %229, %230, %cst_141 {dimension_numbers = #tpu.dot_dimension_numbers<[1], [0], [0], [1], [0, 0, 1, 1], [], []>} : vector<16x16xbf16>, vector<16x1xbf16>, vector<16x1xf32> -> vector<16x1xf32>
    %c0_142 = arith.constant 0 : index
    %c0_143 = arith.constant 0 : index
    %232 = vector.load %arg21[%c0_142, %c0_143] : memref<1x1xf32, #tpu.memory_space<vmem>>, vector<1x1xf32>
    %233 = vector.broadcast %232 : vector<1x1xf32> to vector<16x1xf32>
    %234 = arith.addf %231, %233 : vector<16x1xf32>
    %cst_144 = arith.constant 1.000000e+00 : f32
    %235 = vector.broadcast %cst_144 : f32 to vector<16x1xf32>
    %cst_145 = arith.constant dense<0.000000e+00> : vector<16x16xf32>
    %236 = tpu.matmul %235, %234, %cst_145 {dimension_numbers = #tpu.dot_dimension_numbers<[1], [1], [0], [0], [0, 0, 1, 0], [], []>} : vector<16x1xf32>, vector<16x1xf32>, vector<16x16xf32> -> vector<16x16xf32>
    %237 = tpu.iota {dimensions = array<i32: 0>} : vector<16x16xi32>
    %238 = tpu.iota {dimensions = array<i32: 1>} : vector<16x16xi32>
    %239 = arith.cmpi sle, %238, %237 : vector<16x16xi32>
    %cst_146 = arith.constant -1.000000e+30 : f32
    %240 = vector.broadcast %cst_146 : f32 to vector<16x16xf32>
    %241 = arith.select %239, %236, %240 : vector<16x16xi1>, vector<16x16xf32>
    %cst_147 = arith.constant dense<0xFF800000> : vector<16xf32>
    %242 = vector.multi_reduction <maximumf>, %241, %cst_147 [1] : vector<16x16xf32> to vector<16xf32>
    %243 = vector.shape_cast %242 : vector<16xf32> to vector<16x1xf32>
    %244 = vector.broadcast %243 : vector<16x1xf32> to vector<16x16xf32>
    %245 = arith.subf %241, %244 : vector<16x16xf32>
    %246 = math.exp %245 : vector<16x16xf32>
    %cst_148 = arith.constant dense<0.000000e+00> : vector<16xf32>
    %247 = vector.multi_reduction <add>, %246, %cst_148 [1] : vector<16x16xf32> to vector<16xf32>
    %248 = vector.shape_cast %247 : vector<16xf32> to vector<16x1xf32>
    %249 = tpu.reciprocal %248 {approx = true} : vector<16x1xf32> -> vector<16x1xf32>
    %250 = vector.broadcast %249 : vector<16x1xf32> to vector<16x16xf32>
    %251 = arith.mulf %246, %250 : vector<16x16xf32>
    %252 = arith.truncf %251 : vector<16x16xf32> to vector<16x16xbf16>
    %cst_149 = arith.constant dense<0.000000e+00> : vector<16x32xf32>
    %253 = tpu.matmul %252, %222, %cst_149 {dimension_numbers = #tpu.dot_dimension_numbers<[1], [0], [0], [1], [0, 0, 1, 1], [], []>} : vector<16x16xbf16>, vector<16x32xbf16>, vector<16x32xf32> -> vector<16x32xf32>
    %254 = arith.truncf %253 : vector<16x32xf32> to vector<16x32xbf16>
    %c0_150 = arith.constant 0 : index
    %c0_151 = arith.constant 0 : index
    %255 = vector.load %arg22[%c0_150, %c0_151] : memref<32x16xbf16, #tpu.memory_space<vmem>>, vector<32x16xbf16>
    %cst_152 = arith.constant dense<0.000000e+00> : vector<16x16xf32>
    %256 = tpu.matmul %254, %255, %cst_152 {dimension_numbers = #tpu.dot_dimension_numbers<[1], [0], [0], [1], [0, 0, 1, 1], [], []>} : vector<16x32xbf16>, vector<32x16xbf16>, vector<16x16xf32> -> vector<16x16xf32>
    %c0_153 = arith.constant 0 : index
    %c0_154 = arith.constant 0 : index
    %257 = vector.load %arg23[%c0_153, %c0_154] : memref<1x16xf32, #tpu.memory_space<vmem>>, vector<1x16xf32>
    %258 = vector.broadcast %257 : vector<1x16xf32> to vector<16x16xf32>
    %259 = arith.addf %256, %258 : vector<16x16xf32>
    %cst_155 = arith.constant 0.000000e+00 : f32
    %260 = vector.broadcast %cst_155 : f32 to vector<16x16xf32>
    %261 = arith.maximumf %259, %260 : vector<16x16xf32>
    %262 = arith.truncf %261 : vector<16x16xf32> to vector<16x16xbf16>
    %c0_156 = arith.constant 0 : index
    %c0_157 = arith.constant 0 : index
    %263 = vector.load %arg24[%c0_156, %c0_157] : memref<16x1xbf16, #tpu.memory_space<vmem>>, vector<16x1xbf16>
    %cst_158 = arith.constant dense<0.000000e+00> : vector<16x1xf32>
    %264 = tpu.matmul %262, %263, %cst_158 {dimension_numbers = #tpu.dot_dimension_numbers<[1], [0], [0], [1], [0, 0, 1, 1], [], []>} : vector<16x16xbf16>, vector<16x1xbf16>, vector<16x1xf32> -> vector<16x1xf32>
    %c0_159 = arith.constant 0 : index
    %c0_160 = arith.constant 0 : index
    %265 = vector.load %arg25[%c0_159, %c0_160] : memref<1x1xf32, #tpu.memory_space<vmem>>, vector<1x1xf32>
    %266 = vector.broadcast %265 : vector<1x1xf32> to vector<16x1xf32>
    %267 = arith.addf %264, %266 : vector<16x1xf32>
    %cst_161 = arith.constant 1.000000e+00 : f32
    %268 = vector.broadcast %cst_161 : f32 to vector<1x1xf32>
    %cst_162 = arith.constant dense<0.000000e+00> : vector<1x16xf32>
    %269 = tpu.matmul %268, %267, %cst_162 {dimension_numbers = #tpu.dot_dimension_numbers<[1], [1], [0], [0], [0, 0, 1, 0], [], []>} : vector<1x1xf32>, vector<16x1xf32>, vector<1x16xf32> -> vector<1x16xf32>
    %270 = arith.negf %269 : vector<1x16xf32>
    %271 = math.exp %270 : vector<1x16xf32>
    %cst_163 = arith.constant 1.000000e+00 : f32
    %272 = vector.broadcast %cst_163 : f32 to vector<1x16xf32>
    %273 = arith.addf %272, %271 : vector<1x16xf32>
    %274 = arith.divf %272, %273 : vector<1x16xf32>
    %c0_164 = arith.constant 0 : index
    %c0_165 = arith.constant 0 : index
    %c0_166 = arith.constant 0 : index
    %275 = vector.load %arg26[%c0_164, %c0_165, %c0_166] : memref<1x1x16xf32, #tpu.memory_space<vmem>>, vector<1x1x16xf32>
    %276 = vector.shape_cast %275 : vector<1x1x16xf32> to vector<1x16xf32>
    %277 = vector.shape_cast %274 : vector<1x16xf32> to vector<1x1x16xf32>
    tpu.vector_store %arg26[%c0_164, %c0_165, %c0_166], %277 {strides = array<i32>} : memref<1x1x16xf32, #tpu.memory_space<vmem>>, vector<1x1x16xf32>,
    return
  }
  func.func @transform_0(%arg0: i32) -> (i32, i32, i32) {
    %c0_i32 = arith.constant 0 : i32
    %c0_i32_0 = arith.constant 0 : i32
    %c0_i32_1 = arith.constant 0 : i32
    return %arg0, %c0_i32, %c0_i32_0 : i32, i32, i32
  }
  func.func @transform_1(%arg0: i32) -> (i32, i32, i32) {
    %c0_i32 = arith.constant 0 : i32
    %c0_i32_0 = arith.constant 0 : i32
    %c0_i32_1 = arith.constant 0 : i32
    %c0_i32_2 = arith.constant 0 : i32
    return %c0_i32, %c0_i32_0, %c0_i32_1 : i32, i32, i32
  }
  func.func @transform_2(%arg0: i32) -> (i32, i32) {
    %c0_i32 = arith.constant 0 : i32
    %c0_i32_0 = arith.constant 0 : i32
    %c0_i32_1 = arith.constant 0 : i32
    return %c0_i32, %c0_i32_0 : i32, i32
  }
  func.func @transform_3(%arg0: i32) -> (i32, i32, i32) {
    %c0_i32 = arith.constant 0 : i32
    %c0_i32_0 = arith.constant 0 : i32
    %c0_i32_1 = arith.constant 0 : i32
    %c0_i32_2 = arith.constant 0 : i32
    return %c0_i32, %c0_i32_0, %c0_i32_1 : i32, i32, i32
  }
  func.func @transform_4(%arg0: i32) -> (i32, i32) {
    %c0_i32 = arith.constant 0 : i32
    %c0_i32_0 = arith.constant 0 : i32
    %c0_i32_1 = arith.constant 0 : i32
    return %c0_i32, %c0_i32_0 : i32, i32
  }
  func.func @transform_5(%arg0: i32) -> (i32, i32) {
    %c0_i32 = arith.constant 0 : i32
    %c0_i32_0 = arith.constant 0 : i32
    %c0_i32_1 = arith.constant 0 : i32
    return %c0_i32, %c0_i32_0 : i32, i32
  }
  func.func @transform_6(%arg0: i32) -> (i32, i32) {
    %c0_i32 = arith.constant 0 : i32
    %c0_i32_0 = arith.constant 0 : i32
    %c0_i32_1 = arith.constant 0 : i32
    return %c0_i32, %c0_i32_0 : i32, i32
  }
  func.func @transform_7(%arg0: i32) -> (i32, i32, i32) {
    %c0_i32 = arith.constant 0 : i32
    %c0_i32_0 = arith.constant 0 : i32
    %c0_i32_1 = arith.constant 0 : i32
    %c0_i32_2 = arith.constant 0 : i32
    return %c0_i32, %c0_i32_0, %c0_i32_1 : i32, i32, i32
  }
  func.func @transform_8(%arg0: i32) -> (i32, i32) {
    %c0_i32 = arith.constant 0 : i32
    %c0_i32_0 = arith.constant 0 : i32
    %c0_i32_1 = arith.constant 0 : i32
    return %c0_i32, %c0_i32_0 : i32, i32
  }
  func.func @transform_9(%arg0: i32) -> (i32, i32, i32) {
    %c0_i32 = arith.constant 0 : i32
    %c0_i32_0 = arith.constant 0 : i32
    %c0_i32_1 = arith.constant 0 : i32
    %c0_i32_2 = arith.constant 0 : i32
    return %c0_i32, %c0_i32_0, %c0_i32_1 : i32, i32, i32
  }
  func.func @transform_10(%arg0: i32) -> (i32, i32) {
    %c0_i32 = arith.constant 0 : i32
    %c0_i32_0 = arith.constant 0 : i32
    %c0_i32_1 = arith.constant 0 : i32
    return %c0_i32, %c0_i32_0 : i32, i32
  }
  func.func @transform_11(%arg0: i32) -> (i32, i32) {
    %c0_i32 = arith.constant 0 : i32
    %c0_i32_0 = arith.constant 0 : i32
    %c0_i32_1 = arith.constant 0 : i32
    return %c0_i32, %c0_i32_0 : i32, i32
  }
  func.func @transform_12(%arg0: i32) -> (i32, i32) {
    %c0_i32 = arith.constant 0 : i32
    %c0_i32_0 = arith.constant 0 : i32
    %c0_i32_1 = arith.constant 0 : i32
    return %c0_i32, %c0_i32_0 : i32, i32
  }
  func.func @transform_13(%arg0: i32) -> (i32, i32, i32) {
    %c0_i32 = arith.constant 0 : i32
    %c0_i32_0 = arith.constant 0 : i32
    %c0_i32_1 = arith.constant 0 : i32
    %c0_i32_2 = arith.constant 0 : i32
    return %c0_i32, %c0_i32_0, %c0_i32_1 : i32, i32, i32
  }
  func.func @transform_14(%arg0: i32) -> (i32, i32) {
    %c0_i32 = arith.constant 0 : i32
    %c0_i32_0 = arith.constant 0 : i32
    %c0_i32_1 = arith.constant 0 : i32
    return %c0_i32, %c0_i32_0 : i32, i32
  }
  func.func @transform_15(%arg0: i32) -> (i32, i32, i32) {
    %c0_i32 = arith.constant 0 : i32
    %c0_i32_0 = arith.constant 0 : i32
    %c0_i32_1 = arith.constant 0 : i32
    %c0_i32_2 = arith.constant 0 : i32
    return %c0_i32, %c0_i32_0, %c0_i32_1 : i32, i32, i32
  }
  func.func @transform_16(%arg0: i32) -> (i32, i32) {
    %c0_i32 = arith.constant 0 : i32
    %c0_i32_0 = arith.constant 0 : i32
    %c0_i32_1 = arith.constant 0 : i32
    return %c0_i32, %c0_i32_0 : i32, i32
  }
  func.func @transform_17(%arg0: i32) -> (i32, i32) {
    %c0_i32 = arith.constant 0 : i32
    %c0_i32_0 = arith.constant 0 : i32
    %c0_i32_1 = arith.constant 0 : i32
    return %c0_i32, %c0_i32_0 : i32, i32
  }
  func.func @transform_18(%arg0: i32) -> (i32, i32) {
    %c0_i32 = arith.constant 0 : i32
    %c0_i32_0 = arith.constant 0 : i32
    %c0_i32_1 = arith.constant 0 : i32
    return %c0_i32, %c0_i32_0 : i32, i32
  }
  func.func @transform_19(%arg0: i32) -> (i32, i32) {
    %c0_i32 = arith.constant 0 : i32
    %c0_i32_0 = arith.constant 0 : i32
    %c0_i32_1 = arith.constant 0 : i32
    return %c0_i32, %c0_i32_0 : i32, i32
  }
  func.func @transform_20(%arg0: i32) -> (i32, i32) {
    %c0_i32 = arith.constant 0 : i32
    %c0_i32_0 = arith.constant 0 : i32
    %c0_i32_1 = arith.constant 0 : i32
    return %c0_i32, %c0_i32_0 : i32, i32
  }
  func.func @transform_21(%arg0: i32) -> (i32, i32) {
    %c0_i32 = arith.constant 0 : i32
    %c0_i32_0 = arith.constant 0 : i32
    %c0_i32_1 = arith.constant 0 : i32
    return %c0_i32, %c0_i32_0 : i32, i32
  }
  func.func @transform_22(%arg0: i32) -> (i32, i32) {
    %c0_i32 = arith.constant 0 : i32
    %c0_i32_0 = arith.constant 0 : i32
    %c0_i32_1 = arith.constant 0 : i32
    return %c0_i32, %c0_i32_0 : i32, i32
  }
  func.func @transform_23(%arg0: i32) -> (i32, i32) {
    %c0_i32 = arith.constant 0 : i32
    %c0_i32_0 = arith.constant 0 : i32
    %c0_i32_1 = arith.constant 0 : i32
    return %c0_i32, %c0_i32_0 : i32, i32
  }
  func.func @transform_24(%arg0: i32) -> (i32, i32) {
    %c0_i32 = arith.constant 0 : i32
    %c0_i32_0 = arith.constant 0 : i32
    %c0_i32_1 = arith.constant 0 : i32
    return %c0_i32, %c0_i32_0 : i32, i32
  }
  func.func @transform_25(%arg0: i32) -> (i32, i32, i32) {
    %c0_i32 = arith.constant 0 : i32
    %c0_i32_0 = arith.constant 0 : i32
    %c0_i32_1 = arith.constant 0 : i32
    return %arg0, %c0_i32, %c0_i32_0 : i32, i32, i32
  }
}

</mosaic_0001>

<bundles_post_ra>
// kernel: _lambda_.1
= control target key start
LH: loop header
LB: loop body
LE: loop exit
PB: predicated region body
PF: predicated region fallthrough
CT: control target
= control target key end

     0   :  { %s5213_s0 = inlined_call_operand.vmem [shape: f32[2,16,8], index: 0, kind: input, shape index: {}]   ;;  %s5214_s1 = inlined_call_operand.hbm [shape: bf16[3,8,16], index: 1, kind: input, shape index: {}]   ;;  %s5215_s2 = inlined_call_operand.hbm [shape: f32[1,16], index: 2, kind: input, shape index: {}]   ;;  %s5216_s3 = inlined_call_operand.hbm [shape: bf16[3,16,16], index: 3, kind: input, shape index: {}]   ;;  %s5217_s4 = inlined_call_operand.hbm [shape: f32[1,16], index: 4, kind: input, shape index: {}]   ;;  %s5218_s5 = inlined_call_operand.hbm [shape: bf16[8,16], index: 5, kind: input, shape index: {}]   ;;  %s5219_s6 = inlined_call_operand.hbm [shape: f32[1,16], index: 6, kind: input, shape index: {}]   ;;  %s5220_s7 = inlined_call_operand.hbm [shape: bf16[3,16,32], index: 7, kind: input, shape index: {}]   ;;  %s5221_s8 = inlined_call_operand.hbm [shape: f32[1,32], index: 8, kind: input, shape index: {}]   ;;  %s5222_s9 = inlined_call_operand.vmem [shape: bf16[3,32,32], index: 9, kind: input, shape index: {}]   ;;  %s5223_s10 = inlined_call_operand.hbm [shape: f32[1,32], index: 10, kind: input, shape index: {}]   ;;  %s5224_s11 = inlined_call_operand.hbm [shape: bf16[16,32], index: 11, kind: input, shape index: {}]   ;;  %s5225_s12 = inlined_call_operand.hbm [shape: f32[1,32], index: 12, kind: input, shape index: {}]   ;;  %s5226_s13 = inlined_call_operand.vmem [shape: bf16[3,32,32], index: 13, kind: input, shape index: {}]   ;;  %s5227_s14 = inlined_call_operand.hbm [shape: f32[1,32], index: 14, kind: input, shape index: {}]   ;;  %s5228_s15 = inlined_call_operand.vmem [shape: bf16[3,32,32], index: 15, kind: input, shape index: {}]   ;;  %s5229_s16 = inlined_call_operand.hbm [shape: f32[1,32], index: 16, kind: input, shape index: {}]   ;;  %s5230_s17 = inlined_call_operand.hbm [shape: bf16[32,16], index: 17, kind: input, shape index: {}]   ;;  %s5231_s18 = inlined_call_operand.hbm [shape: f32[1,16], index: 18, kind: input, shape index: {}]   ;;  %s5232_s19 = inlined_call_operand.hbm [shape: bf16[16,1], index: 19, kind: input, shape index: {}]   ;;  %s5233_s20 = inlined_call_operand.<no memory space> [shape: f32[1,1], index: 20, kind: input, shape index: {}, may-alias: {20,24}]   ;;  %s5234_s21 = inlined_call_operand.vmem [shape: bf16[32,16], index: 21, kind: input, shape index: {}]   ;;  %s5235_s22 = inlined_call_operand.vmem [shape: f32[1,16], index: 22, kind: input, shape index: {}]   ;;  %s5236_s23 = inlined_call_operand.vmem [shape: bf16[16,1], index: 23, kind: input, shape index: {}]   ;;  %s5237_s25 = inlined_call_operand.hbm [shape: f32[2,1,16], index: 25, kind: output, shape index: {}]   ;;  %s5238_s24 = inlined_call_operand.<no memory space> [shape: f32[1,1], index: 24, kind: input, shape index: {}, may-alias: {20,24}]  }
   0x1   :  { %5270 = sst [smem:[#allocation49_spill]] %s5213_s0  ;;  %v30_v0 = vstv %s5233_s20  ;;  %v32_v1 = vstv %s5238_s24 }
   0x2   :  { %5271 = sst [smem:[#allocation50_spill]] %s5214_s1  ;;  %31 = vst [vmem:[#allocation2] sm:$0x1] %v30_v0  ;;  %33 = vst [vmem:[#allocation3] sm:$0x1] %v32_v1 }
   0x3   :  { %5272 = sst [smem:[#allocation51_spill]] %s5215_s2 }
   0x4   :  { %5273 = sst [smem:[#allocation52_spill]] %s5216_s3 }
   0x5   :  { %5274 = sst [smem:[#allocation53_spill]] %s5217_s4 }
   0x6   :  { %5275 = sst [smem:[#allocation54_spill]] %s5218_s5 }
   0x7   :  { %5276 = sst [smem:[#allocation55_spill]] %s5219_s6 }
   0x8   :  { %5277 = sst [smem:[#allocation56_spill]] %s5220_s7 }
   0x9   :  { %5278 = sst [smem:[#allocation57_spill]] %s5221_s8 }
   0xa   :  { %5279 = sst [smem:[#allocation58_spill]] %s5222_s9 }
   0xb   :  { %5280 = sst [smem:[#allocation59_spill]] %s5224_s11 }
   0xc   :  { %5281 = sst [smem:[#allocation60_spill]] %s5227_s14 }
   0xd   :  { %5282 = sst [smem:[#allocation61_spill]] %s5235_s22 }
   0xe   :  { %5283 = sst [smem:[#allocation62_spill]] %s5237_s25 }
   0xf   :  { %34 = vsyncpa [#allocation5], 0 }
  0x10   :  { %35 = vsyncpa [#allocation8], 0 }
  0x11   :  { %36 = vsyncpa [#allocation11], 0 }
  0x12   :  { %37 = vsyncpa [#allocation14], 0 }
  0x13   :  { %38 = vsyncpa [#allocation17], 0 }
  0x14   :  { %39 = vsyncpa [#allocation20], 0 }
  0x15   :  { %40 = vsyncpa [#allocation23], 0 }
  0x16   :  { %41 = vsyncpa [#allocation26], 0 }
  0x17   :  { %42 = vsyncpa [#allocation29], 0 }
  0x18   :  { %43 = vsyncpa [#allocation6], 0 }
  0x19   :  { %45 = vsyncpa [#allocation6 + $0x1], 0  ;;  %s4395_s7 = smov 0   ;;  %s4397_s20 = smov 0  }
  0x1a   :  { %s4399_s3 = smov 0   ;;  %s4401_s24 = smov 0  }
  0x1b LB: > { %5284 = sst [smem:[#allocation41_spill]] %s4222_s7  ;;  %s4416_s26 = sadd.s32 4294967295, %s4234_s24   ;;  %s4234_s24 = sphi %s4401_s24, %s5344_s24   ;;  %s4230_s3 = sphi %s4399_s3, %s5347_s3   ;;  %s4226_s20 = sphi %s4397_s20, %s5346_s20   ;;  %s4222_s7 = sphi %s4395_s7, %s5345_s7  }
  0x1c   : > { %5285 = sst [smem:[#allocation42_spill]] %s4226_s20  ;;  %s3029_s1 = sadd.s32 4294967294, %s4234_s24  }
  0x1d   : > { %5286 = sst [smem:[#allocation43_spill]] %s4230_s3  ;;  %s4420_s8 = sadd.s32 1, %s4234_s24  }
  0x1e   : > { %5287 = sst [smem:[#allocation44_spill]] %s4234_s24  ;;  %s588_s27 = sadd.s32 1, %s4230_s3 }
  0x1f   : > { %5288 = sst [smem:[#allocation45_spill]] %s4420_s8  ;;  %s585_s4 = ssub.s32 %s4234_s24, %s4420_s8 }
  0x20   : > { %p598_p0 = scmp.ne.s32.totalorder %s4230_s3, %s4226_s20  ;;  %p586_p1 = scmp.eq.s32.totalorder %s585_s4, 0 }
  0x21   : > { %p599_p2 = scmp.eq.s32.totalorder %s4416_s26, 1  ;;  %p604_p3 = scmp.ne.s32.totalorder %s4226_s20, %s4222_s7 }
  0x22   : > { %p605_p4 = scmp.eq.s32.totalorder %s3029_s1, 1  ;;  %p3030_p7 = scmp.ge.s32.totalorder %s4234_s24, 1 }
  0x23   : > { %s4431_s28 = scalar_select %p586_p1, %s4230_s3, %s588_s27  }
  0x24   : > { %p4433_p5 = por %p599_p2, %p598_p0  ;;  %p4437_p6 = por %p605_p4, %p604_p3 }
  0x25   : > { %5289 = sst [smem:[#allocation46_spill]] %s4431_s28  ;;  %p612_p8 = scmp.lt.s32.totalorder %s4234_s24, 3 }
  0x26   : > { %s5290_s9 = scalar_select %p4433_p5, 1, 0 }
  0x27   : > { %s5292_s5 = scalar_select %p4437_p6, 1, 0 }
  0x28   : > { %5291 = sst [smem:[#allocation47_spill]] %s5290_s9  ;;  %p5254_p9 = scmp.eq.s32.totalorder %s4416_s26, 0 }
  0x29   : > { %5293 = sst [smem:[#allocation48_spill]] %s5292_s5  ;;  %p4444_p10 = pnand %p3030_p7, %p612_p8 }
  0x2a   : > { %s4236_s29 = smov [#allocation7]   ;;  %s4237_s6 = smov [#allocation10]  }
  0x2b   : > { %s5294_s0 = scalar_select %p4444_p10, 1, 0 }
  0x2c   : > { %s638_s2 = sshll.u32 %s4236_s29, 4  ;;  %p3501_p11 = pneg %p4444_p10  ;;  %s639_s2 = int_to_ptr.vmem [resolvable:$true] %s638_s2 }
  0x2d   : > { %s662_s30 = sshll.u32 %s4237_s6, 4  ;;  %s4238_s27 = smov [#allocation13]   ;;  %s4456_s30 = int_to_ptr.vmem [resolvable:$true] %s662_s30 }
  0x2e   : > { %p4452_p12 = pnand %p5254_p9, %p3501_p11  ;;  %s684_s4 = sshll.u32 %s4238_s27, 4  ;;  %s4458_s4 = int_to_ptr.vmem [resolvable:$true] %s684_s4 }
  0x2f   : > { %s5296_s29 = sld [smem:[#allocation51_spill]] }
  0x30   : > { %p4468_p0 = pneg %p4452_p12 }
  0x35   : > { %s3688_s8 = scalar_lea.hbm %s5296_s29, 16 }
  0x36   : > { %p3689_p13 = scmp.ne.s32.totalorder %s5296_s29, %s3688_s8  ;;  %p3695_p3 = scmp.lt.u32.totalorder %s3688_s8, %s5296_s29 }
  0x38   : > { %p3691_p1 = pnand %p4468_p0, %p3689_p13 }
  0x3a   : > { %p3692_p2 = pneg %p3691_p1 }
  0x3c   : > { %p3697_p4 = pnand %p3695_p3, %p3692_p2 }
  0x3e   : > { %3700 = shalt.err (!%p3697_p4)
}
  0x3f   : > { %s3701_s3 = scalar_lea.vmem %s639_s2, 16  ;;  %s3708_s7 = scalar_lea.vmem %s639_s2, 32 }
  0x40   : > { %p3702_p7 = scmp.ne.s32.totalorder %s639_s2, %s3701_s3  ;;  %p3709_p9 = scmp.lt.s32.totalorder %s639_s2, %s639_s2 }
  0x41   : > { %p3710_p6 = scmp.lt.s32.totalorder %s3708_s7, %s3701_s3 }
  0x42   : > { %p3704_p8 = pnand %p3702_p7, %p4468_p0 }
  0x43   : > { %p3711_p5 = por %p3710_p6, %p3709_p9 }
  0x44   : > { %p3705_p11 = pneg %p3704_p8 }
  0x46   : > { %p3712_p10 = pnand %p3711_p5, %p3705_p11 }
  0x48   : > { %3715 = shalt.err (!%p3712_p10)
}
  0x49   : > { %3507 = dma.hbm_to_vmem [thread:$0]  (!%p4452_p12), %s5296_s29, 16, %s639_s2, [#allocation8]  }
  0x4a   : > { %s5298_s27 = sld [smem:[#allocation53_spill]] }
  0x50   : > { %s3716_s25 = scalar_lea.hbm %s5298_s27, 16 }
  0x51   : > { %p3717_p13 = scmp.ne.s32.totalorder %s5298_s27, %s3716_s25  ;;  %p3723_p5 = scmp.lt.u32.totalorder %s3716_s25, %s5298_s27 }
  0x53   : > { %p3719_p1 = pnand %p3717_p13, %p4468_p0 }
  0x55   : > { %p3720_p6 = pneg %p3719_p1 }
  0x57   : > { %p3725_p9 = pnand %p3723_p5, %p3720_p6 }
  0x59   : > { %3728 = shalt.err (!%p3725_p9)
}
  0x5a   : > { %s3729_s2 = scalar_lea.vmem %s4456_s30, 16  ;;  %s3736_s20 = scalar_lea.vmem %s4456_s30, 32 }
  0x5b   : > { %p3730_p10 = scmp.ne.s32.totalorder %s4456_s30, %s3729_s2  ;;  %p3737_p4 = scmp.lt.s32.totalorder %s4456_s30, %s4456_s30 }
  0x5c   : > { %p3738_p7 = scmp.lt.s32.totalorder %s3736_s20, %s3729_s2 }
  0x5d   : > { %p3732_p2 = pnand %p3730_p10, %p4468_p0 }
  0x5e   : > { %p3739_p8 = por %p3738_p7, %p3737_p4 }
  0x5f   : > { %p3733_p3 = pneg %p3732_p2 }
  0x61   : > { %p3740_p11 = pnand %p3739_p8, %p3733_p3 }
  0x63   : > { %3743 = shalt.err (!%p3740_p11)
}
  0x64   : > { %3513 = dma.hbm_to_vmem [thread:$0]  (!%p4452_p12), %s5298_s27, 16, %s4456_s30, [#allocation11]  }
  0x65   : > { %s5299_s24 = sld [smem:[#allocation55_spill]] }
  0x6b   : > { %s5300_s8 = smov %s5299_s24  ;;  %s3744_s3 = scalar_lea.hbm %s5299_s24, 16 }
  0x6c   : > { %p3745_p13 = scmp.ne.s32.totalorder %s5300_s8, %s3744_s3  ;;  %p3751_p5 = scmp.lt.u32.totalorder %s3744_s3, %s5300_s8 }
  0x6e   : > { %p3747_p1 = pnand %p3745_p13, %p4468_p0 }
  0x70   : > { %p3748_p6 = pneg %p3747_p1 }
  0x72   : > { %p3753_p9 = pnand %p3751_p5, %p3748_p6 }
  0x74   : > { %3756 = shalt.err (!%p3753_p9)
}
  0x75   : > { %s3757_s30 = scalar_lea.vmem %s4458_s4, 16  ;;  %s3764_s29 = scalar_lea.vmem %s4458_s4, 32 }
  0x76   : > { %p3758_p10 = scmp.ne.s32.totalorder %s4458_s4, %s3757_s30  ;;  %p3765_p4 = scmp.lt.s32.totalorder %s4458_s4, %s4458_s4 }
  0x77   : > { %p3766_p7 = scmp.lt.s32.totalorder %s3764_s29, %s3757_s30 }
  0x78   : > { %p3760_p2 = pnand %p3758_p10, %p4468_p0 }
  0x79   : > { %p3767_p8 = por %p3766_p7, %p3765_p4 }
  0x7a   : > { %p3761_p3 = pneg %p3760_p2 }
  0x7c   : > { %p3768_p11 = pnand %p3767_p8, %p3761_p3 }
  0x7e   : > { %3771 = shalt.err (!%p3768_p11)
}
  0x7f   : > { %3519 = dma.hbm_to_vmem [thread:$0]  (!%p4452_p12), %s5300_s8, 16, %s4458_s4, [#allocation14]  }
  0x80   : > { %s4239_s28 = smov [#allocation16]   ;;  %s5301_s7 = sld [smem:[#allocation57_spill]] }
  0x81   : > { %s708_s5 = sshll.u32 %s4239_s28, 4  ;;  %s709_s5 = int_to_ptr.vmem [resolvable:$true] %s708_s5 }
  0x86   : > { %s5302_s2 = smov %s5301_s7  ;;  %s3772_s20 = scalar_lea.hbm %s5301_s7, 16 }
  0x87   : > { %p3773_p13 = scmp.ne.s32.totalorder %s5302_s2, %s3772_s20  ;;  %p3779_p5 = scmp.lt.u32.totalorder %s3772_s20, %s5302_s2 }
  0x89   : > { %p3775_p1 = pnand %p3773_p13, %p4468_p0 }
  0x8b   : > { %p3776_p6 = pneg %p3775_p1 }
  0x8d   : > { %p3781_p9 = pnand %p3779_p5, %p3776_p6 }
  0x8f   : > { %3784 = shalt.err (!%p3781_p9)
}
  0x90   : > { %s3785_s4 = scalar_lea.vmem %s709_s5, 16  ;;  %s3792_s25 = scalar_lea.vmem %s709_s5, 32 }
  0x91   : > { %p3786_p10 = scmp.ne.s32.totalorder %s709_s5, %s3785_s4  ;;  %p3793_p4 = scmp.lt.s32.totalorder %s709_s5, %s709_s5 }
  0x92   : > { %p3794_p7 = scmp.lt.s32.totalorder %s3792_s25, %s3785_s4 }
  0x93   : > { %p3788_p2 = pnand %p3786_p10, %p4468_p0 }
  0x94   : > { %p3795_p8 = por %p3794_p7, %p3793_p4 }
  0x95   : > { %p3789_p3 = pneg %p3788_p2 }
  0x97   : > { %p3796_p11 = pnand %p3795_p8, %p3789_p3 }
  0x99   : > { %3799 = shalt.err (!%p3796_p11)
}
  0x9a   : > { %3525 = dma.hbm_to_vmem [thread:$0]  (!%p4452_p12), %s5302_s2, 16, %s709_s5, [#allocation17]  }
  0x9b   : > { %s4240_s22 = smov [#allocation19]   ;;  %s4241_s24 = smov [#allocation22]  }
  0x9c   : > { %s732_s28 = sshll.u32 %s4240_s22, 4  ;;  %s760_s3 = sshll.u32 %s4241_s24, 4  ;;  %s733_s28 = int_to_ptr.vmem [resolvable:$true] %s732_s28  ;;  %s4550_s3 = int_to_ptr.vmem [resolvable:$true] %s760_s3 }
  0x9d   : > { %s5303_s11 = sld [smem:[#allocation59_spill]] }
  0xa3   : > { %s3800_s30 = scalar_lea.hbm %s5303_s11, 128 }
  0xa4   : > { %p3801_p13 = scmp.ne.s32.totalorder %s5303_s11, %s3800_s30  ;;  %p3807_p5 = scmp.lt.u32.totalorder %s3800_s30, %s5303_s11 }
  0xa6   : > { %p3803_p1 = pnand %p3801_p13, %p4468_p0 }
  0xa8   : > { %p3804_p6 = pneg %p3803_p1 }
  0xaa   : > { %p3809_p9 = pnand %p3807_p5, %p3804_p6 }
  0xac   : > { %3812 = shalt.err (!%p3809_p9)
}
  0xad   : > { %s3813_s27 = scalar_lea.vmem %s733_s28, 128  ;;  %p3821_p4 = scmp.lt.s32.totalorder %s733_s28, %s733_s28 }
  0xae   : > { %p3814_p10 = scmp.ne.s32.totalorder %s733_s28, %s3813_s27  ;;  %p3822_p7 = scmp.lt.s32.totalorder %s3813_s27, %s3813_s27 }
  0xb0   : > { %p3816_p2 = pnand %p3814_p10, %p4468_p0  ;;  %p3823_p8 = por %p3822_p7, %p3821_p4 }
  0xb2   : > { %p3817_p3 = pneg %p3816_p2 }
  0xb4   : > { %p3824_p11 = pnand %p3823_p8, %p3817_p3 }
  0xb6   : > { %3827 = shalt.err (!%p3824_p11)
}
  0xb7   : > { %s5263_s9 = smov 64   ;;  %s5267_s22 = smov 4  }
  0xb8   : > { %3531 = dma.hbm_to_vmem [thread:$0]  (!%p4452_p12), %s5303_s11, 128, %s733_s28, [#allocation20], %s5263_s9, %s5263_s9, %s5267_s22  }
  0xb9   : > { %s5304_s14 = sld [smem:[#allocation60_spill]] }
  0xbf   : > { %s3828_s29 = scalar_lea.hbm %s5304_s14, 16 }
  0xc0   : > { %p3829_p13 = scmp.ne.s32.totalorder %s5304_s14, %s3828_s29  ;;  %p3835_p5 = scmp.lt.u32.totalorder %s3828_s29, %s5304_s14 }
  0xc2   : > { %p3831_p1 = pnand %p3829_p13, %p4468_p0 }
  0xc4   : > { %p3832_p6 = pneg %p3831_p1 }
  0xc6   : > { %p3837_p9 = pnand %p3835_p5, %p3832_p6 }
  0xc8   : > { %3840 = shalt.err (!%p3837_p9)
}
  0xc9   : > { %s3841_s28 = scalar_lea.vmem %s4550_s3, 16  ;;  %s3848_s24 = scalar_lea.vmem %s4550_s3, 32 }
  0xca   : > { %p3842_p10 = scmp.ne.s32.totalorder %s4550_s3, %s3841_s28  ;;  %p3849_p4 = scmp.lt.s32.totalorder %s4550_s3, %s4550_s3 }
  0xcb   : > { %p3850_p7 = scmp.lt.s32.totalorder %s3848_s24, %s3841_s28 }
  0xcc   : > { %p3844_p2 = pnand %p3842_p10, %p4468_p0 }
  0xcd   : > { %p3851_p8 = por %p3850_p7, %p3849_p4 }
  0xce   : > { %p3845_p3 = pneg %p3844_p2 }
  0xd0   : > { %p3852_p11 = pnand %p3851_p8, %p3845_p3 }
  0xd2   : > { %3855 = shalt.err (!%p3852_p11)
}
  0xd3   : > { %3537 = dma.hbm_to_vmem [thread:$0]  (!%p4452_p12), %s5304_s14, 16, %s4550_s3, [#allocation23]  }
  0xd4   : > { %s4244_s30 = smov [#allocation25]   ;;  %s4245_s4 = smov [#allocation4]  }
  0xd5   : > { %s784_s29 = sshll.u32 %s4244_s30, 4  ;;  %s624_s25 = sshll.u32 %s4245_s4, 4  ;;  %s785_s29 = int_to_ptr.vmem [resolvable:$true] %s784_s29  ;;  %s4597_s25 = int_to_ptr.vmem [resolvable:$true] %s624_s25 }
  0xd6   : > { %s3856_s28 = scalar_lea.hbm %s5230_s17, 256 }
  0xd7   : > { %p3857_p13 = scmp.ne.s32.totalorder %s5230_s17, %s3856_s28  ;;  %p3863_p5 = scmp.lt.u32.totalorder %s3856_s28, %s5230_s17 }
  0xd9   : > { %p3859_p1 = pnand %p3857_p13, %p4468_p0 }
  0xdb   : > { %p3860_p6 = pneg %p3859_p1 }
  0xdd   : > { %p3865_p9 = pnand %p3863_p5, %p3860_p6 }
  0xdf   : > { %3868 = shalt.err (!%p3865_p9)
}
  0xe0   : > { %s3869_s20 = scalar_lea.vmem %s785_s29, 256  ;;  %p3877_p4 = scmp.lt.s32.totalorder %s785_s29, %s785_s29 }
  0xe1   : > { %p3870_p10 = scmp.ne.s32.totalorder %s785_s29, %s3869_s20  ;;  %p3878_p7 = scmp.lt.s32.totalorder %s3869_s20, %s3869_s20 }
  0xe3   : > { %p3872_p2 = pnand %p3870_p10, %p4468_p0  ;;  %p3879_p8 = por %p3878_p7, %p3877_p4 }
  0xe5   : > { %p3873_p3 = pneg %p3872_p2 }
  0xe7   : > { %p3880_p11 = pnand %p3879_p8, %p3873_p3 }
  0xe9   : > { %3883 = shalt.err (!%p3880_p11)
}
  0xea   : > { %s5305_s9 = smov 64   ;;  %s5306_s28 = sld [smem:[#allocation50_spill]] }
  0xeb   : > { %3543 = dma.hbm_to_vmem [thread:$0]  (!%p4452_p12), %s5230_s17, 256, %s785_s29, [#allocation26], %s5305_s9, %s5305_s9, %s5267_s22  }
  0xf0   : > { %s3884_s24 = scalar_lea.hbm %s5306_s28, 192 }
  0xf1   : > { %p3885_p13 = scmp.ne.s32.totalorder %s5306_s28, %s3884_s24  ;;  %p3891_p5 = scmp.lt.u32.totalorder %s3884_s24, %s5306_s28 }
  0xf3   : > { %p3887_p1 = pnand %p3885_p13, %p4468_p0 }
  0xf5   : > { %p3888_p6 = pneg %p3887_p1 }
  0xf7   : > { %p3893_p9 = pnand %p3891_p5, %p3888_p6 }
  0xf9   : > { %3896 = shalt.err (!%p3893_p9)
}
  0xfa   : > { %s3897_s29 = scalar_lea.vmem %s4597_s25, 192  ;;  %p3905_p4 = scmp.lt.s32.totalorder %s4597_s25, %s4597_s25 }
  0xfb   : > { %p3898_p10 = scmp.ne.s32.totalorder %s4597_s25, %s3897_s29  ;;  %p3906_p7 = scmp.lt.s32.totalorder %s3897_s29, %s3897_s29 }
  0xfd   : > { %p3900_p2 = pnand %p3898_p10, %p4468_p0  ;;  %p3907_p8 = por %p3906_p7, %p3905_p4 }
  0xff   : > { %p3901_p3 = pneg %p3900_p2 }
 0x101   : > { %p3908_p11 = pnand %p3907_p8, %p3901_p3 }
 0x103   : > { %3911 = shalt.err (!%p3908_p11)
}
 0x104   : > { %3504 = dma.hbm_to_vmem [thread:$0]  (!%p4452_p12), %s5306_s28, 192, %s4597_s25, [#allocation5], %s5305_s9, %s5305_s9, %s5267_s22  }
 0x105   : > { %s4246_s4 = smov [#allocation9]   ;;  %s4247_s27 = smov [#allocation12]  }
 0x106   : > { %s648_s5 = sshll.u32 %s4246_s4, 4  ;;  %s673_s24 = sshll.u32 %s4247_s27, 4  ;;  %s649_s5 = int_to_ptr.vmem [resolvable:$true] %s648_s5  ;;  %s4646_s24 = int_to_ptr.vmem [resolvable:$true] %s673_s24 }
 0x107   : > { %s5307_s20 = sld [smem:[#allocation52_spill]] }
 0x10d   : > { %s5308_s29 = smov %s5307_s20  ;;  %s3912_s8 = scalar_lea.hbm %s5307_s20, 384 }
 0x10e   : > { %p3913_p13 = scmp.ne.s32.totalorder %s5308_s29, %s3912_s8  ;;  %p3919_p5 = scmp.lt.u32.totalorder %s3912_s8, %s5308_s29 }
 0x110   : > { %p3915_p1 = pnand %p3913_p13, %p4468_p0 }
 0x112   : > { %p3916_p6 = pneg %p3915_p1 }
 0x114   : > { %p3921_p9 = pnand %p3919_p5, %p3916_p6 }
 0x116   : > { %3924 = shalt.err (!%p3921_p9)
}
 0x117   : > { %s3925_s30 = scalar_lea.vmem %s649_s5, 384  ;;  %p3933_p4 = scmp.lt.s32.totalorder %s649_s5, %s649_s5 }
 0x118   : > { %p3926_p10 = scmp.ne.s32.totalorder %s649_s5, %s3925_s30  ;;  %p3934_p7 = scmp.lt.s32.totalorder %s3925_s30, %s3925_s30 }
 0x11a   : > { %p3928_p2 = pnand %p3926_p10, %p4468_p0  ;;  %p3935_p8 = por %p3934_p7, %p3933_p4 }
 0x11c   : > { %p3929_p3 = pneg %p3928_p2 }
 0x11e   : > { %p3936_p11 = pnand %p3935_p8, %p3929_p3 }
 0x120   : > { %3939 = shalt.err (!%p3936_p11)
}
 0x121   : > { %3510 = dma.hbm_to_vmem [thread:$0]  (!%p4452_p12), %s5308_s29, 384, %s649_s5, [#allocation8], %s5305_s9, %s5305_s9, %s5267_s22  }
 0x122   : > { %s5309_s27 = sld [smem:[#allocation54_spill]] }
 0x128   : > { %s3940_s7 = scalar_lea.hbm %s5309_s27, 64 }
 0x129   : > { %p3941_p13 = scmp.ne.s32.totalorder %s5309_s27, %s3940_s7  ;;  %p3947_p5 = scmp.lt.u32.totalorder %s3940_s7, %s5309_s27 }
 0x12b   : > { %p3943_p1 = pnand %p3941_p13, %p4468_p0 }
 0x12d   : > { %p3944_p6 = pneg %p3943_p1 }
 0x12f   : > { %p3949_p9 = pnand %p3947_p5, %p3944_p6 }
 0x131   : > { %3952 = shalt.err (!%p3949_p9)
}
 0x132   : > { %s3953_s5 = scalar_lea.vmem %s4646_s24, 64  ;;  %p3961_p4 = scmp.lt.s32.totalorder %s4646_s24, %s4646_s24 }
 0x133   : > { %p3954_p10 = scmp.ne.s32.totalorder %s4646_s24, %s3953_s5  ;;  %p3962_p7 = scmp.lt.s32.totalorder %s3953_s5, %s3953_s5 }
 0x135   : > { %p3956_p2 = pnand %p3954_p10, %p4468_p0  ;;  %p3963_p8 = por %p3962_p7, %p3961_p4 }
 0x137   : > { %p3957_p3 = pneg %p3956_p2 }
 0x139   : > { %p3964_p11 = pnand %p3963_p8, %p3957_p3 }
 0x13b   : > { %3967 = shalt.err (!%p3964_p11)
}
 0x13c   : > { %3516 = dma.hbm_to_vmem [thread:$0]  (!%p4452_p12), %s5309_s27, 64, %s4646_s24, [#allocation11]  }
 0x13d   : > { %s4248_s14 = smov [#allocation15]   ;;  %s4249_s4 = smov [#allocation18]  }
 0x13e   : > { %s694_s8 = sshll.u32 %s4248_s14, 4  ;;  %s722_s7 = sshll.u32 %s4249_s4, 4  ;;  %s695_s8 = int_to_ptr.vmem [resolvable:$true] %s694_s8  ;;  %s4692_s7 = int_to_ptr.vmem [resolvable:$true] %s722_s7 }
 0x13f   : > { %s5310_s2 = sld [smem:[#allocation56_spill]] }
 0x145   : > { %s3968_s25 = scalar_lea.hbm %s5310_s2, 384 }
 0x146   : > { %p3969_p13 = scmp.ne.s32.totalorder %s5310_s2, %s3968_s25  ;;  %p3975_p5 = scmp.lt.u32.totalorder %s3968_s25, %s5310_s2 }
 0x148   : > { %p3971_p1 = pnand %p3969_p13, %p4468_p0 }
 0x14a   : > { %p3972_p6 = pneg %p3971_p1 }
 0x14c   : > { %p3977_p9 = pnand %p3975_p5, %p3972_p6 }
 0x14e   : > { %3980 = shalt.err (!%p3977_p9)
}
 0x14f   : > { %s3981_s11 = scalar_lea.vmem %s695_s8, 384  ;;  %p3989_p4 = scmp.lt.s32.totalorder %s695_s8, %s695_s8 }
 0x150   : > { %p3982_p10 = scmp.ne.s32.totalorder %s695_s8, %s3981_s11  ;;  %p3990_p7 = scmp.lt.s32.totalorder %s3981_s11, %s3981_s11 }
 0x152   : > { %p3984_p2 = pnand %p3982_p10, %p4468_p0  ;;  %p3991_p8 = por %p3990_p7, %p3989_p4 }
 0x154   : > { %p3985_p3 = pneg %p3984_p2 }
 0x156   : > { %p3992_p11 = pnand %p3991_p8, %p3985_p3 }
 0x158   : > { %3995 = shalt.err (!%p3992_p11)
}
 0x159   : > { %s5311_s22 = smov 4   ;;  %s3996_s25 = scalar_lea.hbm %s5223_s10, 16 }
 0x15a   : > { %3522 = dma.hbm_to_vmem [thread:$0]  (!%p4452_p12), %s5310_s2, 384, %s695_s8, [#allocation14], %s5305_s9, %s5305_s9, %s5311_s22  }
 0x15b   : > { %p3997_p13 = scmp.ne.s32.totalorder %s5223_s10, %s3996_s25  ;;  %p4003_p5 = scmp.lt.u32.totalorder %s3996_s25, %s5223_s10 }
 0x15d   : > { %p3999_p1 = pnand %p3997_p13, %p4468_p0 }
 0x15f   : > { %p4000_p6 = pneg %p3999_p1 }
 0x161   : > { %p4005_p9 = pnand %p4003_p5, %p4000_p6 }
 0x163   : > { %4008 = shalt.err (!%p4005_p9)
}
 0x164   : > { %s4009_s8 = scalar_lea.vmem %s4692_s7, 16  ;;  %s4016_s14 = scalar_lea.vmem %s4692_s7, 32 }
 0x165   : > { %p4010_p10 = scmp.ne.s32.totalorder %s4692_s7, %s4009_s8  ;;  %p4017_p4 = scmp.lt.s32.totalorder %s4692_s7, %s4692_s7 }
 0x166   : > { %p4018_p7 = scmp.lt.s32.totalorder %s4016_s14, %s4009_s8 }
 0x167   : > { %p4012_p2 = pnand %p4010_p10, %p4468_p0 }
 0x168   : > { %p4019_p8 = por %p4018_p7, %p4017_p4 }
 0x169   : > { %p4013_p3 = pneg %p4012_p2 }
 0x16b   : > { %p4020_p11 = pnand %p4019_p8, %p4013_p3 }
 0x16d   : > { %4023 = shalt.err (!%p4020_p11)
}
 0x16e   : > { %3528 = dma.hbm_to_vmem [thread:$0]  (!%p4452_p12), %s5223_s10, 16, %s4692_s7, [#allocation17]  }
 0x16f   : > { %s4250_s20 = smov [#allocation21]   ;;  %s4251_s5 = smov [#allocation24]  }
 0x170   : > { %s746_s25 = sshll.u32 %s4250_s20, 4  ;;  %s774_s30 = sshll.u32 %s4251_s5, 4  ;;  %s747_s25 = int_to_ptr.vmem [resolvable:$true] %s746_s25  ;;  %s4739_s30 = int_to_ptr.vmem [resolvable:$true] %s774_s30 }
 0x171   : > { %s4024_s8 = scalar_lea.hbm %s5225_s12, 16 }
 0x172   : > { %p4025_p13 = scmp.ne.s32.totalorder %s5225_s12, %s4024_s8  ;;  %p4031_p5 = scmp.lt.u32.totalorder %s4024_s8, %s5225_s12 }
 0x174   : > { %p4027_p1 = pnand %p4025_p13, %p4468_p0 }
 0x176   : > { %p4028_p6 = pneg %p4027_p1 }
 0x178   : > { %p4033_p9 = pnand %p4031_p5, %p4028_p6 }
 0x17a   : > { %4036 = shalt.err (!%p4033_p9)
}
 0x17b   : > { %s4037_s3 = scalar_lea.vmem %s747_s25, 16  ;;  %s4044_s20 = scalar_lea.vmem %s747_s25, 32 }
 0x17c   : > { %p4038_p10 = scmp.ne.s32.totalorder %s747_s25, %s4037_s3  ;;  %p4045_p4 = scmp.lt.s32.totalorder %s747_s25, %s747_s25 }
 0x17d   : > { %p4046_p7 = scmp.lt.s32.totalorder %s4044_s20, %s4037_s3 }
 0x17e   : > { %p4040_p2 = pnand %p4038_p10, %p4468_p0 }
 0x17f   : > { %p4047_p8 = por %p4046_p7, %p4045_p4 }
 0x180   : > { %p4041_p3 = pneg %p4040_p2 }
 0x182   : > { %p4048_p11 = pnand %p4047_p8, %p4041_p3 }
 0x184   : > { %4051 = shalt.err (!%p4048_p11)
}
 0x185   : > { %3534 = dma.hbm_to_vmem [thread:$0]  (!%p4452_p12), %s5225_s12, 16, %s747_s25, [#allocation20]  }
 0x186   : > { %s4052_s8 = scalar_lea.hbm %s5229_s16, 16 }
 0x187   : > { %p4053_p13 = scmp.ne.s32.totalorder %s5229_s16, %s4052_s8  ;;  %p4059_p5 = scmp.lt.u32.totalorder %s4052_s8, %s5229_s16 }
 0x189   : > { %p4055_p1 = pnand %p4053_p13, %p4468_p0 }
 0x18b   : > { %p4056_p6 = pneg %p4055_p1 }
 0x18d   : > { %p4061_p9 = pnand %p4059_p5, %p4056_p6 }
 0x18f   : > { %4064 = shalt.err (!%p4061_p9)
}
 0x190   : > { %s4065_s25 = scalar_lea.vmem %s4739_s30, 16  ;;  %s4072_s20 = scalar_lea.vmem %s4739_s30, 32 }
 0x191   : > { %p4066_p10 = scmp.ne.s32.totalorder %s4739_s30, %s4065_s25  ;;  %p4073_p4 = scmp.lt.s32.totalorder %s4739_s30, %s4739_s30 }
 0x192   : > { %p4074_p7 = scmp.lt.s32.totalorder %s4072_s20, %s4065_s25 }
 0x193   : > { %p4068_p2 = pnand %p4066_p10, %p4468_p0 }
 0x194   : > { %p4075_p8 = por %p4074_p7, %p4073_p4 }
 0x195   : > { %p4069_p3 = pneg %p4068_p2 }
 0x197   : > { %p4076_p11 = pnand %p4075_p8, %p4069_p3 }
 0x199   : > { %4079 = shalt.err (!%p4076_p11)
}
 0x19a   : > { %3540 = dma.hbm_to_vmem [thread:$0]  (!%p4452_p12), %s5229_s16, 16, %s4739_s30, [#allocation23]  }
 0x19b   : > { %s4252_s24 = smov [#allocation27]   ;;  %s4253_s8 = smov [#allocation28]  }
 0x19c   : > { %s798_s11 = sshll.u32 %s4252_s24, 4  ;;  %s808_s14 = sshll.u32 %s4253_s8, 4  ;;  %s799_s11 = int_to_ptr.vmem [resolvable:$true] %s798_s11  ;;  %s4783_s14 = int_to_ptr.vmem [resolvable:$true] %s808_s14 }
 0x19d   : > { %s4080_s3 = scalar_lea.hbm %s5231_s18, 16 }
 0x19e   : > { %p4081_p13 = scmp.ne.s32.totalorder %s5231_s18, %s4080_s3  ;;  %p4087_p5 = scmp.lt.u32.totalorder %s4080_s3, %s5231_s18 }
 0x1a0   : > { %p4083_p1 = pnand %p4081_p13, %p4468_p0 }
 0x1a2   : > { %p4084_p6 = pneg %p4083_p1 }
 0x1a4   : > { %p4089_p9 = pnand %p4087_p5, %p4084_p6 }
 0x1a6   : > { %4092 = shalt.err (!%p4089_p9)
}
 0x1a7   : > { %s4093_s5 = scalar_lea.vmem %s799_s11, 16  ;;  %s4100_s24 = scalar_lea.vmem %s799_s11, 32 }
 0x1a8   : > { %p4094_p10 = scmp.ne.s32.totalorder %s799_s11, %s4093_s5  ;;  %p4101_p4 = scmp.lt.s32.totalorder %s799_s11, %s799_s11 }
 0x1a9   : > { %p4102_p7 = scmp.lt.s32.totalorder %s4100_s24, %s4093_s5 }
 0x1aa   : > { %p4096_p2 = pnand %p4094_p10, %p4468_p0 }
 0x1ab   : > { %p4103_p8 = por %p4102_p7, %p4101_p4 }
 0x1ac   : > { %p4097_p3 = pneg %p4096_p2 }
 0x1ae   : > { %p4104_p11 = pnand %p4103_p8, %p4097_p3 }
 0x1b0   : > { %4107 = shalt.err (!%p4104_p11)
}
 0x1b1   : > { %3546 = dma.hbm_to_vmem [thread:$0]  (!%p4452_p12), %s5231_s18, 16, %s799_s11, [#allocation26]  }
 0x1b2   : > { %s4108_s25 = scalar_lea.hbm %s5232_s19, 128 }
 0x1b3   : > { %p4109_p13 = scmp.ne.s32.totalorder %s5232_s19, %s4108_s25  ;;  %p4115_p5 = scmp.lt.u32.totalorder %s4108_s25, %s5232_s19 }
 0x1b5   : > { %p4111_p1 = pnand %p4109_p13, %p4468_p0 }
 0x1b7   : > { %p4112_p6 = pneg %p4111_p1 }
 0x1b9   : > { %p4117_p9 = pnand %p4115_p5, %p4112_p6 }
 0x1bb   : > { %4120 = shalt.err (!%p4117_p9)
}
 0x1bc   : > { %s4121_s11 = scalar_lea.vmem %s4783_s14, 128  ;;  %p4129_p4 = scmp.lt.s32.totalorder %s4783_s14, %s4783_s14 }
 0x1bd   : > { %p4122_p10 = scmp.ne.s32.totalorder %s4783_s14, %s4121_s11  ;;  %p4130_p7 = scmp.lt.s32.totalorder %s4121_s11, %s4121_s11 }
 0x1bf   : > { %p4124_p2 = pnand %p4122_p10, %p4468_p0  ;;  %p4131_p8 = por %p4130_p7, %p4129_p4 }
 0x1c1   : > { %p4125_p3 = pneg %p4124_p2 }
 0x1c3   : > { %p4132_p11 = pnand %p4131_p8, %p4125_p3 }
 0x1c5   : > { %4135 = shalt.err (!%p4132_p11)
}
 0x1c6   : > { %3549 = dma.hbm_to_vmem [thread:$0]  (!%p4452_p12), %s5232_s19, 128, %s4783_s14, [#allocation29], %s5305_s9, %s5305_s9, %s5311_s22  }
 0x1c7   : > { %p5312_p13 = scmp.ne.s32.totalorder %s5294_s0, 0 }
 0x1c8   : > { %p5313_p0 = scmp.eq.s32.totalorder (!%p5312_p13), %s4416_s26, 0 }
 0x1c9   : > { %847 = sbr.rel (%p5312_p13) target bundleno = 3817 (0xee9), region = 120 }
 0x1d0   : > { %4181 = dma.done.wait (%p5313_p0), [#allocation5], 192   ;;  %p5314_p1 = pmov %p5313_p0 }
 0x1d1   : > { %p5315_p6 = pmov %p5313_p0 }
 0x1d2   : > { %4183 = vsyncadd (%p5314_p1), [#allocation5], 4294967104 }
 0x1d3   : > { %4185 = dma.done.wait (%p5315_p6), [#allocation8], 400   ;;  %p5316_p5 = pmov %p5313_p0 }
 0x1d4   : > { %p5317_p9 = pmov %p5313_p0 }
 0x1d5   : > { %4187 = vsyncadd (%p5316_p5), [#allocation8], 4294966896 }
 0x1d6   : > { %4189 = dma.done.wait (%p5317_p9), [#allocation11], 80   ;;  %p5318_p12 = pmov %p5313_p0 }
 0x1d7   : > { %p5319_p10 = pmov %p5313_p0 }
 0x1d8   : > { %4191 = vsyncadd (%p5318_p12), [#allocation11], 4294967216 }
 0x1d9   : > { %4193 = dma.done.wait (%p5319_p10), [#allocation14], 400   ;;  %p5320_p2 = pmov %p5313_p0 }
 0x1da   : > { %p5321_p3 = pmov %p5313_p0 }
 0x1db   : > { %4195 = vsyncadd (%p5320_p2), [#allocation14], 4294966896 }
 0x1dc   : > { %4197 = dma.done.wait (%p5321_p3), [#allocation17], 32   ;;  %p5322_p4 = pmov %p5313_p0 }
 0x1dd   : > { %p5323_p7 = pmov %p5313_p0 }
 0x1de   : > { %4199 = vsyncadd (%p5322_p4), [#allocation17], 4294967264 }
 0x1df   : > { %4201 = dma.done.wait (%p5323_p7), [#allocation20], 144   ;;  %p5324_p8 = pmov %p5313_p0 }
 0x1e0   : > { %p5325_p11 = pmov %p5313_p0 }
 0x1e1   : > { %4203 = vsyncadd (%p5324_p8), [#allocation20], 4294967152 }
 0x1e2   : > { %4205 = dma.done.wait (%p5325_p11), [#allocation23], 32   ;;  %p5326_p13 = pmov %p5313_p0 }
 0x1e4   : > { %4207 = vsyncadd (%p5326_p13), [#allocation23], 4294967264 }
 0x1e5   : > { %4209 = dma.done.wait (%p5313_p0), [#allocation26], 272   ;;  %p5327_p1 = pmov %p5313_p0 }
 0x1e6   : > { %p5328_p6 = pmov %p5313_p0 }
 0x1e7   : > { %4211 = vsyncadd (%p5327_p1), [#allocation26], 4294967024 }
 0x1e8   : > { %4213 = dma.done.wait (%p5328_p6), [#allocation29], 128   ;;  %p5329_p5 = pmov %p5313_p0 }
 0x1e9   : > { %p974_p9 = scmp.lt.s32.totalorder %s4416_s26, 1  ;;  %v980_v2 = vlaneseq  ;;  %v4254_v3 = vmov 0.0   ;;  %vm4255_vm0 = vmmov 0   ;;  %vm1020_vm1 = vcmask 1043456   ;;  %s5330_s22 = sld [smem:[#allocation49_spill]]  ;;  %v3641_v26 = vld [vmem:[#allocation9 + $0x8] sm:$0xff]  }
 0x1ea   : > { %4215 = vsyncadd (%p5329_p5), [#allocation29], 4294967168  ;;  %3239 = vmatprep.subr.bf16.mxu0 %v4254_v3  ;;  %3245 = vmatprep.subr.bf16.mxu1 %v4254_v3  ;;  %v1015_v5 = vld [vmem:[#allocation4 + $0x4] sm:$0xf]  ;;  %v999_v6 = vld [vmem:[#allocation4] sm:$0xf] }
 0x1eb   : > { %3241 = vmatprep.mubr.msk.bf16.mxu0 %vm4255_vm0, %v4254_v3  ;;  %3247 = vmatprep.mubr.msk.bf16.mxu1 %vm4255_vm0, %v4254_v3  ;;  %s975_s0 = scalar_select %p974_p9, %s4416_s26, 1  ;;  %v4876_v4 = vshrl.u32 %v980_v2, 7  ;;  %v1022_v8 = vsel %vm1020_vm1, %v1015_v5, 0  ;;  %v1069_v9 = vsel %vm1020_vm1, %v999_v6, 0  ;;  %v1114_v15 = vld [vmem:[#allocation4 + $0x8] sm:$0xf] }
 0x1ec   : > { %3240 = vmatpush3.bf16.msra.mxu0 %v1022_v8  ;;  %3246 = vmatpush3.bf16.msra.mxu1 %v1069_v9  ;;  %vm1016_vm6 = vcmask 64512   ;;  %v1119_v16 = vsel %vm1020_vm1, %v1114_v15, 0  ;;  %v3642_v27 = vld [vmem:[#allocation9] sm:$0xff]   ;;  %v3070_v39 = vld [vmem:[#allocation7] ss:$0 sm:$0xff]  ;;  %vm1200_vm7 = vcmask 130048  }
 0x1ed   : > { %s3170_s1 = sshll.u32 %s975_s0, 4  ;;  %vm1002_vm2 = vcmp.lt.s32.totalorder %v4876_v4, 1  ;;  %vm1005_vm3 = vcmp.ge.s32.totalorder %v4876_v4, 1  ;;  %vm987_vm4 = vcmp.lt.s32.totalorder %v4876_v4, 2  ;;  %vm990_vm5 = vcmp.ge.s32.totalorder %v4876_v4, 2  ;;  %3251 = vmatprep.subr.bf16.mxu0 %v4254_v3  ;;  %3257 = vmatprep.subr.bf16.mxu1 %v4254_v3  ;;  %v3643_v61 = vld [vmem:[#allocation9 + $0x10] sm:$0xff]  }
 0x1ee   : > { %v1362_v54 = vld [vmem:[#allocation12] sm:$0xf]  ;;  %v3644_v1 = vld [vmem:[#allocation15 + $0x8] sm:$0xff]   ;;  %v3645_v5 = vld [vmem:[#allocation15] sm:$0xff]   ;;  %vm1420_vm8 = vcmp.lt.s32.totalorder %v4876_v4, 4  ;;  %vm1423_vm9 = vcmp.ge.s32.totalorder %v4876_v4, 4 }
 0x1ef   : > { %s978_s14 = scalar_lea.vmem %s5330_s22, %s3170_s1  ;;  %v1371_v0 = vsel %vm1020_vm1, %v1362_v54, 0  ;;  %s5331_s3 = sld [smem:[#allocation58_spill]]  ;;  %vm1646_vm10 = vcmask 261120   ;;  %vm2434_vm11 = vcmask 7168   ;;  %vm2804_vm15 = vcmask 122880  }
 0x1f0   : > { %v983_v7 = vld [vmem:[%s978_s14] sm:$0xff]  ;;  %v984_v10 = vld [vmem:[%s978_s14 + $0x8] sm:$0xff]  ;;  %vm5122_vm12 = vmpackc.low %vm2434_vm11, %vm2434_vm11  ;;  %s5335_s9 = sld [smem:[#allocation61_spill]]  ;;  %s5336_s22 = sld [smem:[#allocation42_spill]] }
 0x1f1   : > { %v1000_v11 = vrot.slane %v983_v7, 7  ;;  %v985_v12 = vrot.slane %v983_v7, 6  ;;  %v1001_v13 = vrot.slane %v984_v10, 7  ;;  %v986_v14 = vrot.slane %v984_v10, 6  ;;  %s5337_s14 = sld [smem:[#allocation47_spill]]  ;;  %s3167_s7 = sshll.u32 %s4416_s26, 4 }
 0x1f2   : > { %v1112_v25 = vpack.c.bf16 %v984_v10, %v983_v7  ;;  %s5338_s5 = sld [smem:[#allocation62_spill]]  ;;  %s4258_s26 = smov [#allocation30]  }
 0x1f3   : > { %v1003_v17 = vsel %vm1002_vm2, %v1000_v11, %v1001_v13  ;;  %v1004_v18 = vsel %vm1002_vm2, %v1001_v13, %v1000_v11  ;;  %v988_v19 = vsel %vm987_vm4, %v985_v12, %v986_v14  ;;  %v989_v20 = vsel %vm987_vm4, %v986_v14, %v985_v12  ;;  %s4140_s0 = sshll.u32 %s4258_s26, 4  ;;  %s4141_s0 = int_to_ptr.vmem [resolvable:$false] %s4140_s0 }
 0x1f4   : > { %v1011_v21 = vsel %vm1005_vm3, %v1004_v18, 0.0  ;;  %v996_v22 = vsel %vm990_vm5, %v989_v20, 0.0  ;;  %v3078_v18 = vld [vmem:[#allocation13] ss:$0 sm:$0xff]  ;;  %s4142_s1 = scalar_lea.vmem %s4141_s0, 32 }
 0x1f5   : > { %v1013_v23 = vpack.c.bf16 %v1003_v17, %v1011_v21  ;;  %v998_v24 = vpack.c.bf16 %v988_v19, %v996_v22  ;;  %v3077_v17 = vld [vmem:[#allocation10] ss:$0 sm:$0xff]  ;;  %s5332_s25 = smov %s5331_s3 }
 0x1f6   : > { %v3649_v54 = vld [vmem:[%s5332_s25 + $0x18] sm:$0xff]   ;;  %s972_s4 = sand.u32 1, %s5336_s22  }
 0x1f7   : > { %3242 = vmatmul.mubr.msk.bf16.vlgmr.msra.gmra.mrb[0].mxu0 %vm1016_vm6, %v1013_v23  ;;  %3248 = vmatmul.mubr.msk.bf16.vlgmr.msra.gmra.mrb[0].mxu1 %vm1016_vm6, %v998_v24  ;;  %s2807_s24 = scalar_lea.sflag [#allocation6], %s972_s4  ;;  %p5339_p10 = scmp.ne.s32.totalorder %s5337_s14, 0 }
 0x1f8   : > { %3252 = vmatpush3.bf16.msra.mxu0 %v1119_v16  ;;  %3253 = vmatprep.mubr.msk.bf16.mxu0 %vm4255_vm0, %v4254_v3  ;;  %s5171_s11 = scalar_lea.hbm %s5338_s5, %s3167_s7 }
 0x1f9   : > { %3263 = vmatprep.subr.bf16.mxu0 %v4254_v3  ;;  %3259 = vmatprep.mubr.msk.bf16.mxu1 %vm4255_vm0, %v4254_v3 }
 0x1fa   : > { %3258 = vmatpush3.bf16.msra.mxu1 %v3641_v26 }
 0x1fb   : > { %3269 = vmatprep.subr.bf16.mxu1 %v4254_v3 }
 0x1ff   : > { %3254 = vmatmul.mubr.msk.bf16.vlgmr.msra.gmra.mrb[4].mxu0 %vm1016_vm6, %v1112_v25 }
 0x200   : > { %3265 = vmatprep.mubr.msk.bf16.mxu0 %vm4255_vm0, %v4254_v3  ;;  %3264 = vmatpush3.bf16.msra.mxu0 %v3642_v27 }
 0x201   : > { %3275 = vmatprep.subr.bf16.mxu0 %v4254_v3 }
 0x2ca   : > { %v1058_v28 = vpop.f32.mrb[0].mxu0  ;;  %v1105_v29 = vpop.f32.mrb[0].mxu1 }
 0x2cb   : > { %v1106_v30 = vadd.f32 %v1105_v29, %v1058_v28  ;;  %v3243_v31 = vpop.f32.mrb[1].mxu0  ;;  %v3249_v32 = vpop.f32.mrb[1].mxu1 }
 0x2cc   : > { %v1061_v33 = vpop.f32.mrb[2].mxu0  ;;  %v1108_v34 = vpop.f32.mrb[2].mxu1 }
 0x2cd   : > { %v1109_v35 = vadd.f32 %v1108_v34, %v1061_v33  ;;  %v3244_v36 = vpop.f32.mrb[3].mxu0  ;;  %v3250_v37 = vpop.f32.mrb[3].mxu1 }
 0x2d2   : > { %v1155_v38 = vpop.f32.mrb[4].mxu0 }
 0x2d3   : > { %v1162_v40 = vadd.f32 %v1155_v38, %v1106_v30  ;;  %v3255_v41 = vpop.f32.mrb[5].mxu0 }
 0x2d4   : > { %v1158_v42 = vpop.f32.mrb[6].mxu0 }
 0x2d5   : > { %v1171_v43 = vadd.f32 %v3070_v39, %v1162_v40  ;;  %v1163_v44 = vadd.f32 %v1158_v42, %v1109_v35  ;;  %v3256_v45 = vpop.f32.mrb[7].mxu0 }
 0x2d7   : > { %v1173_v46 = vmax.f32 %v1171_v43, 0.0  ;;  %v1172_v47 = vadd.f32 %v3070_v39, %v1163_v44 }
 0x2d9   : > { %v1174_v48 = vmax.f32 %v1172_v47, 0.0  ;;  %v1175_v49 = vrot.slane %v1173_v46, 6  ;;  %v1184_v50 = vrot.slane %v1173_v46, 7 }
 0x2db   : > { %v1176_v51 = vrot.slane %v1174_v48, 6  ;;  %v1185_v52 = vrot.slane %v1174_v48, 7  ;;  %v1295_v53 = vpack.c.bf16 %v1174_v48, %v1173_v46 }
 0x2dd   : > { %v1177_v55 = vsel %vm987_vm4, %v1175_v49, %v1176_v51  ;;  %v1178_v56 = vsel %vm987_vm4, %v1176_v51, %v1175_v49  ;;  %v1186_v57 = vsel %vm1002_vm2, %v1184_v50, %v1185_v52  ;;  %v1187_v58 = vsel %vm1002_vm2, %v1185_v52, %v1184_v50  ;;  %v3646_v49 = vld [vmem:[#allocation15 + $0x10] sm:$0xff]   ;;  %v3647_v52 = vld [vmem:[%s5331_s3 + $0x10] sm:$0xff]   ;;  %s973_s3 = scalar_lea.vmem [#allocation30], %s972_s4 }
 0x2de   : > { %v1188_v59 = vsel %vm1005_vm3, %v1187_v58, 0.0  ;;  %v1179_v60 = vsel %vm990_vm5, %v1178_v56, 0.0  ;;  %s2819_s20 = sshll.u32 %s973_s3, 4  ;;  %s5173_s20 = int_to_ptr.vmem [resolvable:$true] %s2819_s20 }
 0x2df   : > { %v1190_v62 = vpack.c.bf16 %v1186_v57, %v1188_v59  ;;  %v1181_v63 = vpack.c.bf16 %v1177_v55, %v1179_v60  ;;  %v3650_v55 = vld [vmem:[%s5332_s25 + $0x8] sm:$0xff]   ;;  %s4136_s8 = scalar_lea.vmem %s5173_s20, 16  ;;  %p4143_p4 = scmp.lt.s32.totalorder %s5173_s20, %s4141_s0 }
 0x2e0   : > { %p4137_p12 = scmp.ne.s32.totalorder %s5173_s20, %s4136_s8  ;;  %p4144_p7 = scmp.lt.s32.totalorder %s4142_s1, %s4136_s8 }
 0x2e1   : > { %3260 = vmatmul.mubr.msk.bf16.vlgmr.msra.gmra.mrb[4].mxu1 %vm1200_vm7, %v1190_v62  ;;  %3266 = vmatmul.mubr.msk.bf16.vlgmr.msra.gmra.mrb[8].mxu0 %vm1200_vm7, %v1181_v63 }
 0x2e2   : > { %3270 = vmatpush3.bf16.msra.mxu1 %v3643_v61  ;;  %3276 = vmatpush3.bf16.msra.mxu0 %v1371_v0  ;;  %p4138_p2 = pnand %p4137_p12, %p5339_p10  ;;  %p4145_p8 = por %p4144_p7, %p4143_p4 }
 0x2e3   : > { %3271 = vmatprep.mubr.msk.bf16.mxu1 %vm4255_vm0, %v4254_v3  ;;  %3277 = vmatprep.mubr.msk.bf16.mxu0 %vm4255_vm0, %v4254_v3 }
 0x2e4   : > { %3281 = vmatprep.subr.bf16.mxu1 %v4254_v3  ;;  %3287 = vmatprep.subr.bf16.mxu0 %v4254_v3  ;;  %p4139_p3 = pneg %p4138_p2 }
 0x2e6   : > { %p4146_p11 = pnand %p4145_p8, %p4139_p3 }
 0x2e9   : > { %3272 = vmatmul.mubr.msk.bf16.vlgmr.msra.gmra.mrb[8].mxu1 %vm1200_vm7, %v1295_v53  ;;  %3278 = vmatmul.mubr.msk.bf16.vlgmr.msra.gmra.mrb[12].mxu0 %vm1016_vm6, %v1112_v25  ;;  %v3648_v53 = vld [vmem:[%s5332_s25] sm:$0xff]  }
 0x2ea   : > { %3283 = vmatprep.mubr.msk.bf16.mxu1 %vm4255_vm0, %v4254_v3  ;;  %3289 = vmatprep.mubr.msk.bf16.mxu0 %vm4255_vm0, %v4254_v3 }
 0x2eb   : > { %3282 = vmatpush3.bf16.msra.mxu1 %v3644_v1  ;;  %3288 = vmatpush3.bf16.msra.mxu0 %v3645_v5 }
 0x2ec   : > { %3293 = vmatprep.subr.bf16.mxu1 %v4254_v3  ;;  %3299 = vmatprep.subr.bf16.mxu0 %v4254_v3 }
 0x3b4   : > { %v1238_v6 = vpop.f32.mrb[4].mxu1  ;;  %v1288_v7 = vpop.f32.mrb[8].mxu0 }
 0x3b5   : > { %v1289_v8 = vadd.f32 %v1288_v7, %v1238_v6  ;;  %v3261_v9 = vpop.f32.mrb[5].mxu1  ;;  %v3267_v10 = vpop.f32.mrb[9].mxu0  ;;  %v3086_v6 = vld [vmem:[#allocation16] ss:$0 sm:$0xff] }
 0x3b6   : > { %v1241_v11 = vpop.f32.mrb[6].mxu1  ;;  %v1291_v12 = vpop.f32.mrb[10].mxu0 }
 0x3b7   : > { %v1292_v13 = vadd.f32 %v1291_v12, %v1241_v11  ;;  %v3262_v14 = vpop.f32.mrb[7].mxu1  ;;  %v3268_v15 = vpop.f32.mrb[11].mxu0 }
 0x3bc   : > { %v1342_v16 = vpop.f32.mrb[8].mxu1  ;;  %v1407_v19 = vpop.f32.mrb[12].mxu0 }
 0x3bd   : > { %v1349_v20 = vadd.f32 %v1342_v16, %v1289_v8  ;;  %v3273_v21 = vpop.f32.mrb[9].mxu1  ;;  %v3279_v22 = vpop.f32.mrb[13].mxu0  ;;  %v1408_v26 = vadd.f32 %v3078_v18, %v1407_v19 }
 0x3be   : > { %v1345_v23 = vpop.f32.mrb[10].mxu1  ;;  %v1410_v24 = vpop.f32.mrb[14].mxu0 }
 0x3bf   : > { %v1358_v25 = vadd.f32 %v3077_v17, %v1349_v20  ;;  %v1350_v27 = vadd.f32 %v1345_v23, %v1292_v13  ;;  %v3274_v28 = vpop.f32.mrb[11].mxu1  ;;  %v3280_v29 = vpop.f32.mrb[15].mxu0  ;;  %v1411_v34 = vadd.f32 %v3078_v18, %v1410_v24 }
 0x3c0   : > { %v3653_v28 = vld [vmem:[#allocation19] sm:$0xff]  }
 0x3c1   : > { %v1360_v30 = vmax.f32 %v1358_v25, 0.0  ;;  %v1359_v31 = vadd.f32 %v3077_v17, %v1350_v27  ;;  %v3651_v27 = vld [vmem:[%s5332_s25 + $0x20] sm:$0xff]  }
 0x3c3   : > { %v1414_v32 = vadd.f32 %v1408_v26, %v1360_v30  ;;  %v1361_v33 = vmax.f32 %v1359_v31, 0.0  ;;  %v3652_v31 = vld [vmem:[%s5332_s25 + $0x28] sm:$0xff]  }
 0x3c5   : > { %v1416_v35 = vmax.f32 %v1414_v32, 0.0  ;;  %v1415_v36 = vadd.f32 %v1411_v34, %v1361_v33  ;;  %v3654_v32 = vld [vmem:[%s5226_s13] sm:$0xff]   ;;  %v3655_v33 = vld [vmem:[%s5226_s13 + $0x8] sm:$0xff]   ;;  %v3656_v34 = vld [vmem:[%s5226_s13 + $0x10] sm:$0xff]  }
 0x3c7   : > { %v1417_v37 = vmax.f32 %v1415_v36, 0.0  ;;  %v1418_v38 = vrot.slane %v1416_v35, 4  ;;  %v1434_v39 = vrot.slane %v1416_v35, 6 }
 0x3c9   : > { %v1419_v40 = vrot.slane %v1417_v37, 4  ;;  %v1435_v41 = vrot.slane %v1417_v37, 6  ;;  %v4945_v42 = vpack.c.bf16 %v1417_v37, %v1416_v35  ;;  %v3657_v35 = vld [vmem:[%s5226_s13 + $0x18] sm:$0xff]  }
 0x3cb   : > { %v1421_v43 = vsel %vm1420_vm8, %v1418_v38, %v1419_v40  ;;  %v1422_v44 = vsel %vm1420_vm8, %v1419_v40, %v1418_v38  ;;  %v1436_v45 = vsel %vm987_vm4, %v1434_v39, %v1435_v41  ;;  %v1437_v46 = vsel %vm987_vm4, %v1435_v41, %v1434_v39 }
 0x3cc   : > { %v1438_v47 = vsel %vm990_vm5, %v1437_v46, 0.0  ;;  %v1429_v48 = vsel %vm1423_vm9, %v1422_v44, 0.0 }
 0x3cd   : > { %v1440_v50 = vpack.c.bf16 %v1436_v45, %v1438_v47  ;;  %v1431_v51 = vpack.c.bf16 %v1421_v43, %v1429_v48  ;;  %v3104_v47 = vld [vmem:[#allocation18] ss:$0 sm:$0xff] }
 0x3cf   : > { %3284 = vmatmul.mubr.msk.bf16.vlgmr.msra.gmra.mrb[12].mxu1 %vm1200_vm7, %v1440_v50  ;;  %3290 = vmatmul.mubr.msk.bf16.vlgmr.msra.gmra.mrb[16].mxu0 %vm1200_vm7, %v1431_v51 }
 0x3d0   : > { %3294 = vmatpush3.bf16.msra.mxu1 %v3646_v49  ;;  %3295 = vmatprep.mubr.msk.bf16.mxu1 %vm4255_vm0, %v4254_v3 }
 0x3d1   : > { %3307 = vmatprep.subr.bf16.mxu1 %v4254_v3  ;;  %3303 = vmatprep.mubr.msk.bf16.mxu0 %vm4255_vm0, %v4254_v3 }
 0x3d2   : > { %3300 = vmatpush3.bf16.msra.mxu0 %v3647_v52  ;;  %v3105_v52 = vld [vmem:[#allocation21] ss:$0 sm:$0xff] }
 0x3d3   : > { %3301 = vmatprep.subr.bf16.mxu0 %v4254_v3 }
 0x3d6   : > { %3302 = vmatpush3.bf16.msra.mxu0 %v3649_v54 }
 0x3d7   : > { %3296 = vmatmul.mubr.msk.bf16.vlgmr.msra.gmra.mrb[16].mxu1 %vm1200_vm7, %v4945_v42  ;;  %3315 = vmatprep.subr.bf16.mxu0 %v4254_v3 }
 0x3d8   : > { %3311 = vmatprep.mubr.msk.bf16.mxu1 %vm4255_vm0, %v4254_v3  ;;  %3308 = vmatpush3.bf16.msra.mxu1 %v3648_v53 }
 0x3d9   : > { %3309 = vmatprep.subr.bf16.mxu1 %v4254_v3 }
 0x3dc   : > { %3310 = vmatpush3.bf16.msra.mxu1 %v3650_v55 }
 0x3dd   : > { %3323 = vmatprep.subr.bf16.mxu1 %v4254_v3 }
 0x4a2   : > { %v1487_v56 = vpop.f32.mrb[12].mxu1  ;;  %v1537_v57 = vpop.f32.mrb[16].mxu0 }
 0x4a3   : > { %v1538_v58 = vadd.f32 %v1537_v57, %v1487_v56  ;;  %v3285_v59 = vpop.f32.mrb[13].mxu1  ;;  %v3291_v60 = vpop.f32.mrb[17].mxu0 }
 0x4a4   : > { %v1490_v61 = vpop.f32.mrb[14].mxu1  ;;  %v1540_v62 = vpop.f32.mrb[18].mxu0 }
 0x4a5   : > { %v1541_v63 = vadd.f32 %v1540_v62, %v1490_v61  ;;  %v3286_v0 = vpop.f32.mrb[15].mxu1  ;;  %v3292_v1 = vpop.f32.mrb[19].mxu0 }
 0x4aa   : > { %v1591_v5 = vpop.f32.mrb[16].mxu1 }
 0x4ab   : > { %v1598_v7 = vadd.f32 %v1591_v5, %v1538_v58  ;;  %v3297_v8 = vpop.f32.mrb[17].mxu1 }
 0x4ac   : > { %v1594_v9 = vpop.f32.mrb[18].mxu1 }
 0x4ad   : > { %v1607_v10 = vadd.f32 %v3086_v6, %v1598_v7  ;;  %v1599_v11 = vadd.f32 %v1594_v9, %v1541_v63  ;;  %v3298_v12 = vpop.f32.mrb[19].mxu1 }
 0x4af   : > { %v1609_v13 = vmax.f32 %v1607_v10, 0.0  ;;  %v1608_v14 = vadd.f32 %v3086_v6, %v1599_v11 }
 0x4b1   : > { %v1610_v15 = vmax.f32 %v1608_v14, 0.0  ;;  %v1611_v16 = vrot.slane %v1609_v13, 4  ;;  %v1622_v17 = vrot.slane %v1609_v13, 6 }
 0x4b3   : > { %v1612_v18 = vrot.slane %v1610_v15, 4  ;;  %v1623_v19 = vrot.slane %v1610_v15, 6  ;;  %v1747_v20 = vpack.c.bf16 %v1610_v15, %v1609_v13  ;;  %v3658_v13 = vld [vmem:[%s5226_s13 + $0x20] sm:$0xff]   ;;  %v3659_v15 = vld [vmem:[%s5226_s13 + $0x28] sm:$0xff]  }
 0x4b5   : > { %v1613_v21 = vsel %vm1420_vm8, %v1611_v16, %v1612_v18  ;;  %v1614_v22 = vsel %vm1420_vm8, %v1612_v18, %v1611_v16  ;;  %v1624_v23 = vsel %vm987_vm4, %v1622_v17, %v1623_v19  ;;  %v1625_v24 = vsel %vm987_vm4, %v1623_v19, %v1622_v17  ;;  %v3660_v17 = vld [vmem:[%s5228_s15] sm:$0xff]   ;;  %v3661_v18 = vld [vmem:[%s5228_s15 + $0x8] sm:$0xff]   ;;  %v3662_v19 = vld [vmem:[%s5228_s15 + $0x10] sm:$0xff]  }
 0x4b6   : > { %v1626_v25 = vsel %vm990_vm5, %v1625_v24, 0.0  ;;  %v1615_v26 = vsel %vm1423_vm9, %v1614_v22, 0.0 }
 0x4b7   : > { %v1628_v29 = vpack.c.bf16 %v1624_v23, %v1626_v25  ;;  %v1617_v30 = vpack.c.bf16 %v1613_v21, %v1615_v26 }
 0x4b9   : > { %3304 = vmatmul.mubr.msk.bf16.vlgmr.msra.gmra.mrb[20].mxu0 %vm1646_vm10, %v1628_v29  ;;  %3312 = vmatmul.mubr.msk.bf16.vlgmr.msra.gmra.mrb[20].mxu1 %vm1646_vm10, %v1617_v30 }
 0x4ba   : > { %3316 = vmatpush3.bf16.msra.mxu0 %v3651_v27  ;;  %3324 = vmatpush3.bf16.msra.mxu1 %v3653_v28 }
 0x4bb   : > { %3317 = vmatprep.subr.bf16.mxu0 %v4254_v3  ;;  %3319 = vmatprep.mubr.msk.bf16.mxu0 %vm4255_vm0, %v4254_v3 }
 0x4bc   : > { %3325 = vmatprep.mubr.msk.bf16.mxu1 %vm4255_vm0, %v4254_v3  ;;  %3337 = vmatprep.subr.bf16.mxu1 %v4254_v3 }
 0x4be   : > { %3318 = vmatpush3.bf16.msra.mxu0 %v3652_v31 }
 0x4bf   : > { %3329 = vmatprep.subr.bf16.mxu0 %v4254_v3 }
 0x4c1   : > { %3320 = vmatmul.mubr.msk.bf16.vlgmr.msra.gmra.mrb[24].mxu0 %vm1646_vm10, %v1747_v20  ;;  %3326 = vmatmul.mubr.msk.bf16.vlgmr.msra.gmra.mrb[24].mxu1 %vm1200_vm7, %v4945_v42  ;;  %v3663_v20 = vld [vmem:[%s5228_s15 + $0x18] sm:$0xff]  }
 0x4c2   : > { %3341 = vmatprep.mubr.msk.bf16.mxu1 %vm4255_vm0, %v4254_v3  ;;  %3333 = vmatprep.mubr.msk.bf16.mxu0 %vm4255_vm0, %v4254_v3 }
 0x4c3   : > { %3338 = vmatpush3.bf16.msra.mxu1 %v3654_v32  ;;  %3330 = vmatpush3.bf16.msra.mxu0 %v3656_v34  ;;  %v3125_v32 = vld [vmem:[#allocation22] ss:$0 sm:$0xff] }
 0x4c4   : > { %3339 = vmatprep.subr.bf16.mxu1 %v4254_v3  ;;  %3331 = vmatprep.subr.bf16.mxu0 %v4254_v3 }
 0x4c7   : > { %3340 = vmatpush3.bf16.msra.mxu1 %v3655_v33  ;;  %3332 = vmatpush3.bf16.msra.mxu0 %v3657_v35 }
 0x4c8   : > { %3353 = vmatprep.subr.bf16.mxu1 %v4254_v3  ;;  %3345 = vmatprep.subr.bf16.mxu0 %v4254_v3 }
 0x58c   : > { %v1684_v36 = vpop.f32.mrb[20].mxu0  ;;  %v1740_v37 = vpop.f32.mrb[20].mxu1 }
 0x58d   : > { %v1741_v38 = vadd.f32 %v1740_v37, %v1684_v36  ;;  %v3305_v39 = vpop.f32.mrb[21].mxu0  ;;  %v3313_v40 = vpop.f32.mrb[21].mxu1 }
 0x58e   : > { %v1687_v41 = vpop.f32.mrb[22].mxu0  ;;  %v1743_v42 = vpop.f32.mrb[22].mxu1 }
 0x58f   : > { %v1744_v43 = vadd.f32 %v1743_v42, %v1687_v41  ;;  %v3306_v44 = vpop.f32.mrb[23].mxu0  ;;  %v3314_v45 = vpop.f32.mrb[23].mxu1 }
 0x594   : > { %v1802_v46 = vpop.f32.mrb[24].mxu0  ;;  %v1871_v48 = vpop.f32.mrb[24].mxu1 }
 0x595   : > { %v1809_v49 = vadd.f32 %v1802_v46, %v1741_v38  ;;  %v3321_v50 = vpop.f32.mrb[25].mxu0  ;;  %v3327_v51 = vpop.f32.mrb[25].mxu1  ;;  %v1872_v60 = vadd.f32 %v3105_v52, %v1871_v48 }
 0x596   : > { %v1805_v53 = vpop.f32.mrb[26].mxu0  ;;  %v1874_v54 = vpop.f32.mrb[26].mxu1  ;;  %v3665_v51 = vld [vmem:[%s5228_s15 + $0x28] sm:$0xff]  }
 0x597   : > { %v1818_v55 = vadd.f32 %v3104_v47, %v1809_v49  ;;  %v1810_v56 = vadd.f32 %v1805_v53, %v1744_v43  ;;  %v3322_v57 = vpop.f32.mrb[27].mxu0  ;;  %v3328_v58 = vpop.f32.mrb[27].mxu1  ;;  %v1875_v0 = vadd.f32 %v3105_v52, %v1874_v54  ;;  %v3664_v49 = vld [vmem:[%s5228_s15 + $0x20] sm:$0xff]  }
 0x598   : > { %v3666_v52 = vld [vmem:[#allocation25] sm:$0xff]   ;;  %v3667_v53 = vld [vmem:[#allocation25 + $0x8] sm:$0xff]  }
 0x599   : > { %v1820_v59 = vmax.f32 %v1818_v55, 0.0  ;;  %v1819_v61 = vadd.f32 %v3104_v47, %v1810_v56 }
 0x59b   : > { %v1878_v62 = vadd.f32 %v1872_v60, %v1820_v59  ;;  %v1821_v63 = vmax.f32 %v1819_v61, 0.0 }
 0x59d   : > { %v5036_v1 = vmax.f32 %v1878_v62, 0.0  ;;  %v1879_v5 = vadd.f32 %v1875_v0, %v1821_v63 }
 0x59f   : > { %v1890_v6 = vpack.c.bf16 %v5036_v1, %v4254_v3  ;;  %v5040_v7 = vmax.f32 %v1879_v5, 0.0  ;;  %v1895_v8 = vrot.slane %v5036_v1, 4  ;;  %v3143_v5 = vld [vmem:[#allocation24] ss:$0 sm:$0xff] }
 0x5a1   : > { %v1896_v9 = vrot.slane %v5040_v7, 4  ;;  %3342 = vmatmul.mubr.msk.bf16.vlgmr.msra.gmra.mrb[28].mxu1 %vm1646_vm10, %v1890_v6  ;;  %v2019_v16 = vpack.c.bf16 %v5040_v7, %v5036_v1 }
 0x5a2   : > { %3357 = vmatprep.mubr.msk.bf16.mxu1 %vm4255_vm0, %v4254_v3  ;;  %3354 = vmatpush3.bf16.msra.mxu1 %v3662_v19 }
 0x5a3   : > { %v1897_v10 = vsel %vm1420_vm8, %v1895_v8, %v1896_v9  ;;  %v1898_v11 = vsel %vm1420_vm8, %v1896_v9, %v1895_v8  ;;  %3355 = vmatprep.subr.bf16.mxu1 %v4254_v3 }
 0x5a4   : > { %v1899_v12 = vsel %vm1423_vm9, %v1898_v11, 0.0 }
 0x5a5   : > { %v1901_v14 = vpack.c.bf16 %v1897_v10, %v1899_v12 }
 0x5a6   : > { %3356 = vmatpush3.bf16.msra.mxu1 %v3663_v20 }
 0x5a7   : > { %3334 = vmatmul.mubr.msk.bf16.vlgmr.msra.gmra.mrb[28].mxu0 %vm1646_vm10, %v1901_v14  ;;  %3369 = vmatprep.subr.bf16.mxu1 %v4254_v3 }
 0x5a8   : > { %3346 = vmatpush3.bf16.msra.mxu0 %v3658_v13  ;;  %3349 = vmatprep.mubr.msk.bf16.mxu0 %vm4255_vm0, %v4254_v3 }
 0x5a9   : > { %3347 = vmatprep.subr.bf16.mxu0 %v4254_v3 }
 0x5ac   : > { %3348 = vmatpush3.bf16.msra.mxu0 %v3659_v15 }
 0x5ad   : > { %3361 = vmatprep.subr.bf16.mxu0 %v4254_v3 }
 0x5af   : > { %3350 = vmatmul.mubr.msk.bf16.vlgmr.msra.gmra.mrb[32].mxu0 %vm1646_vm10, %v2019_v16 }
 0x5b0   : > { %3365 = vmatprep.mubr.msk.bf16.mxu0 %vm4255_vm0, %v4254_v3  ;;  %3362 = vmatpush3.bf16.msra.mxu0 %v3660_v17 }
 0x5b1   : > { %3363 = vmatprep.subr.bf16.mxu0 %v4254_v3 }
 0x5b4   : > { %3364 = vmatpush3.bf16.msra.mxu0 %v3661_v18 }
 0x5b5   : > { %3377 = vmatprep.subr.bf16.mxu0 %v4254_v3 }
 0x674   : > { %v2012_v21 = vpop.f32.mrb[28].mxu1 }
 0x675   : > { %v3343_v22 = vpop.f32.mrb[29].mxu1 }
 0x676   : > { %v2015_v23 = vpop.f32.mrb[30].mxu1  ;;  %v3144_v22 = vld [vmem:[#allocation27] ss:$0 sm:$0xff] }
 0x677   : > { %v3344_v24 = vpop.f32.mrb[31].mxu1 }
 0x67a   : > { %v1956_v25 = vpop.f32.mrb[28].mxu0 }
 0x67b   : > { %v2013_v26 = vadd.f32 %v2012_v21, %v1956_v25  ;;  %v3335_v27 = vpop.f32.mrb[29].mxu0  ;;  %v3668_v21 = vld [vmem:[#allocation28] sm:$0xff]  }
 0x67c   : > { %v1959_v28 = vpop.f32.mrb[30].mxu0 }
 0x67d   : > { %v2016_v29 = vadd.f32 %v2015_v23, %v1959_v28  ;;  %v3336_v30 = vpop.f32.mrb[31].mxu0 }
 0x67e   : > { %v4256_v30 = vmov 1.0  }
 0x682   : > { %v2074_v31 = vpop.f32.mrb[32].mxu0 }
 0x683   : > { %v2081_v33 = vadd.f32 %v2074_v31, %v2013_v26  ;;  %v3351_v34 = vpop.f32.mrb[33].mxu0  ;;  %v3148_v31 = vld [vmem:[#allocation2] ss:$0 sm:$0xff] }
 0x684   : > { %v2077_v35 = vpop.f32.mrb[34].mxu0 }
 0x685   : > { %v2090_v36 = vadd.f32 %v3125_v32, %v2081_v33  ;;  %v2082_v37 = vadd.f32 %v2077_v35, %v2016_v29  ;;  %v3352_v38 = vpop.f32.mrb[35].mxu0 }
 0x687   : > { %v2092_v39 = vmax.f32 %v2090_v36, 0.0  ;;  %v2091_v40 = vadd.f32 %v3125_v32, %v2082_v37 }
 0x689   : > { %v2096_v41 = vpack.c.bf16 %v2092_v39, %v4254_v3  ;;  %v2093_v42 = vmax.f32 %v2091_v40, 0.0  ;;  %v2101_v43 = vrot.slane %v2092_v39, 4  ;;  %v2520_v40 = vand.u32 127, %v980_v2 }
 0x68b   : > { %v2102_v44 = vrot.slane %v2093_v42, 4  ;;  %v2225_v45 = vpack.c.bf16 %v2093_v42, %v2092_v39  ;;  %3366 = vmatmul.mubr.msk.bf16.vlgmr.msra.gmra.mrb[36].mxu0 %vm1646_vm10, %v2096_v41  ;;  %v982_v41 = vadd.s32 8, %v4876_v4  ;;  %vm2521_vm13 = vcmp.le.s32.totalorder %v2520_v40, %v4876_v4 }
 0x68c   : > { %3381 = vmatprep.mubr.msk.bf16.mxu0 %vm4255_vm0, %v4254_v3  ;;  %3378 = vmatpush3.bf16.msra.mxu0 %v3666_v52 }
 0x68d   : > { %v2103_v46 = vsel %vm1420_vm8, %v2101_v43, %v2102_v44  ;;  %v2104_v47 = vsel %vm1420_vm8, %v2102_v44, %v2101_v43  ;;  %3379 = vmatprep.subr.bf16.mxu0 %v4254_v3  ;;  %vm2522_vm14 = vcmp.le.s32.totalorder %v2520_v40, %v982_v41 }
 0x68e   : > { %v2105_v48 = vsel %vm1423_vm9, %v2104_v47, 0.0 }
 0x68f   : > { %v2107_v50 = vpack.c.bf16 %v2103_v46, %v2105_v48 }
 0x690   : > { %3380 = vmatpush3.bf16.msra.mxu0 %v3667_v53 }
 0x691   : > { %3358 = vmatmul.mubr.msk.bf16.vlgmr.msra.gmra.mrb[32].mxu1 %vm1646_vm10, %v2107_v50 }
 0x692   : > { %3370 = vmatpush3.bf16.msra.mxu1 %v3664_v49  ;;  %3373 = vmatprep.mubr.msk.bf16.mxu1 %vm4255_vm0, %v4254_v3 }
 0x693   : > { %3371 = vmatprep.subr.bf16.mxu1 %v4254_v3 }
 0x696   : > { %3372 = vmatpush3.bf16.msra.mxu1 %v3665_v51 }
 0x697   : > { %3385 = vmatprep.subr.bf16.mxu1 %v4254_v3 }
 0x699   : > { %3374 = vmatmul.mubr.msk.bf16.vlgmr.msra.gmra.mrb[36].mxu1 %vm1646_vm10, %v2225_v45 }
 0x69a   : > { %3387 = vmatprep.mubr.msk.bf16.mxu1 %vm4255_vm0, %v4254_v3  ;;  %3386 = vmatpush3.bf16.msra.mxu1 %v3668_v21 }
 0x69b   : > { %3398 = vmatprep.subr.bf16.mxu1 %v4254_v3 }
 0x75e   : > { %v2218_v54 = vpop.f32.mrb[36].mxu0 }
 0x75f   : > { %v3367_v55 = vpop.f32.mrb[37].mxu0 }
 0x760   : > { %v2221_v56 = vpop.f32.mrb[38].mxu0 }
 0x761   : > { %v3368_v57 = vpop.f32.mrb[39].mxu0 }
 0x764   : > { %v2162_v58 = vpop.f32.mrb[32].mxu1 }
 0x765   : > { %v2219_v59 = vadd.f32 %v2218_v54, %v2162_v58  ;;  %v3359_v60 = vpop.f32.mrb[33].mxu1 }
 0x766   : > { %v2165_v61 = vpop.f32.mrb[34].mxu1 }
 0x767   : > { %v2222_v62 = vadd.f32 %v2221_v56, %v2165_v61  ;;  %v3360_v63 = vpop.f32.mrb[35].mxu1  ;;  %v3669_v56 = vld [vmem:[%s5234_s21] sm:$0xff]  }
 0x76c   : > { %v2280_v0 = vpop.f32.mrb[36].mxu1 }
 0x76d   : > { %v2287_v6 = vadd.f32 %v2280_v0, %v2219_v59  ;;  %v3375_v8 = vpop.f32.mrb[37].mxu1  ;;  %v3670_v0 = vld [vmem:[%s5234_s21 + $0x8] sm:$0xff]  }
 0x76e   : > { %v2283_v9 = vpop.f32.mrb[38].mxu1 }
 0x76f   : > { %v2296_v10 = vadd.f32 %v3143_v5, %v2287_v6  ;;  %v2288_v11 = vadd.f32 %v2283_v9, %v2222_v62  ;;  %v3376_v12 = vpop.f32.mrb[39].mxu1 }
 0x770   : > { %v3156_v12 = vld [vmem:[%s5335_s9] ss:$0 sm:$0xff] }
 0x771   : > { %v2298_v13 = vmax.f32 %v2296_v10, 0.0  ;;  %v2297_v14 = vadd.f32 %v3143_v5, %v2288_v11  ;;  %v3671_v11 = vld [vmem:[%s5236_s23] sm:$0xff]  }
 0x773   : > { %v2300_v15 = vadd.f32 %v2298_v13, %v5036_v1  ;;  %v2299_v16 = vmax.f32 %v2297_v14, 0.0 }
 0x775   : > { %v2301_v17 = vadd.f32 %v2299_v16, %v5040_v7  ;;  %v2302_v18 = vmax.f32 %v2300_v15, 0.0 }
 0x777   : > { %v2303_v19 = vmax.f32 %v2301_v17, 0.0 }
 0x779   : > { %v2304_v20 = vpack.c.bf16 %v2303_v19, %v2302_v18 }
 0x77b   : > { %3382 = vmatmul.mubr.msk.bf16.vlgmr.msra.gmra.mrb[40].mxu0 %vm1646_vm10, %v2304_v20 }
 0x77c   : > { %3395 = vmatprep.mubr.msk.f32.mxu0 %vm2434_vm11, %v4256_v30 }
 0x84e   : > { %v2365_v23 = vpop.f32.mrb[40].mxu0 }
 0x84f   : > { %v2366_v24 = vadd.f32 %v3144_v22, %v2365_v23  ;;  %v3383_v25 = vpop.f32.mrb[41].mxu0 }
 0x850   : > { %v2368_v26 = vpop.f32.mrb[42].mxu0 }
 0x851   : > { %v2369_v27 = vadd.f32 %v3144_v22, %v2368_v26  ;;  %v3384_v28 = vpop.f32.mrb[43].mxu0  ;;  %3672 = vtanh.f32 %v2366_v24  ;;  %v3160_v22 = vld [vmem:[#allocation3] ss:$0 sm:$0xff] }
 0x853   : > { %3674 = vtanh.f32 %v2369_v27 }
 0x85b   : > { %v3673_v1 = vpop.eup %3672 }
 0x85d   : > { %v3675_v7 = vpop.eup %3674 }
 0x85e   : > { %v2374_v29 = vpack.c.bf16 %v3675_v7, %v3673_v1 }
 0x860   : > { %3388 = vmatmul.mubr.msk.bf16.vlgmr.msra.gmra.mrb[40].mxu1 %vm1200_vm7, %v2374_v29 }
 0x861   : > { %3399 = vmatpush3.bf16.msra.mxu1 %v2304_v20  ;;  %3400 = vmatprep.mubr.msk.bf16.mxu1 %vm4255_vm0, %v4254_v3 }
 0x862   : > { %3412 = vmatprep.subr.bf16.mxu1 %v4254_v3 }
 0x933   : > { %v2427_v32 = vpop.f32.mrb[40].mxu1 }
 0x934   : > { %v3389_v33 = vpop.f32.mrb[41].mxu1  ;;  %v2428_v35 = vadd.f32 %v3148_v31, %v2427_v32 }
 0x935   : > { %v2430_v34 = vpop.f32.mrb[42].mxu1 }
 0x936   : > { %v2431_v36 = vadd.f32 %v3148_v31, %v2430_v34  ;;  %v3390_v37 = vpop.f32.mrb[43].mxu1 }
 0x938   : > { %v3425_v39 = vpack.c.bf16 %v2431_v36, %v2428_v35 }
 0x93a   : > { %3427 = vmatprep.subr.msk.bf16.mxu0 %vm5122_vm12, %v3425_v39 }
 0x93b   : > { %3430 = vmatpush3.bf16.xpose.msk.msra.mxu0 %vm5122_vm12, %v3425_v39 }
 0x93c   : > { %3404 = vmatprep.subr.bf16.mxu0 %v4254_v3 }
 0x942   : > { %3396 = vmatmul.mubr.msk.f32.vlgmr.msra.gmra.mrb[44].mxu0 %vm2434_vm11, %v4256_v30 }
 0x943   : > { %3408 = vmatprep.mubr.msk.bf16.mxu0 %vm4255_vm0, %v4254_v3  ;;  %3405 = vmatpush3.bf16.msra.mxu0 %v3669_v56 }
 0x944   : > { %3406 = vmatprep.subr.bf16.mxu0 %v4254_v3 }
 0x947   : > { %3407 = vmatpush3.bf16.msra.mxu0 %v3670_v0 }
 0xa15   : > { %v3397_v42 = vpop.f32.mrb[44].mxu0 }
 0xa16   : > { %v2510_v43 = vpop.f32.mrb[45].mxu0  ;;  %v2524_v46 = vsel %vm2522_vm14, %v3397_v42, -1e+30 }
 0xa17   : > { %v2523_v44 = vsel %vm2521_vm13, %v2510_v43, -1e+30  ;;  %v2528_v47 = vsel %vm1200_vm7, %v2524_v46, -inf }
 0xa18   : > { %v2525_v45 = vsel %vm1200_vm7, %v2523_v44, -inf }
 0xa19   : > { %2526 = vmax.xlane.f32.xlu0 %v2525_v45 }
 0xa1d   : > { %2529 = vmax.xlane.f32.xlu0 %v2528_v47 }
 0xaa6   : > { %v2527_v48 = vpop.xlane.xlu0 %2526 }
 0xaa7   : > { %v2531_v49 = vsub.f32 %v2523_v44, %v2527_v48 }
 0xaa9   : > { %v2533_v50 = vmul.f32 1.442695, %v2531_v49 }
 0xaaa   : > { %v2530_v51 = vpop.xlane.xlu0 %2529 }
 0xaab   : > { %3676 = vpow2.f32 %v2533_v50  ;;  %v2532_v2 = vsub.f32 %v2524_v46, %v2530_v51 }
 0xaad   : > { %v2535_v52 = vmul.f32 1.442695, %v2532_v2 }
 0xaaf   : > { %3678 = vpow2.f32 %v2535_v52 }
 0xab5   : > { %v3677_v4 = vpop.eup %3676 }
 0xab6   : > { %v2537_v53 = vsel %vm1200_vm7, %v3677_v4, 0.0 }
 0xab7   : > { %2538 = vadd.xlane.f32.xlu1 %v2537_v53 }
 0xab9   : > { %v3679_v54 = vpop.eup %3678 }
 0xaba   : > { %v2540_v55 = vsel %vm1200_vm7, %v3679_v54, 0.0 }
 0xabb   : > { %2541 = vadd.xlane.f32.xlu1 %v2540_v55 }
 0xb44   : > { %v2539_v57 = vpop.xlane.xlu1 %2538 }
 0xb45   : > { %3680 = vrcp.f32 %v2539_v57 }
 0xb48   : > { %v2542_v58 = vpop.xlane.xlu1 %2541 }
 0xb49   : > { %3682 = vrcp.f32 %v2542_v58 }
 0xb4f   : > { %v3681_v59 = vpop.eup %3680 }
 0xb50   : > { %v2545_v61 = vmul.f32 %v3681_v59, %v3677_v4 }
 0xb53   : > { %v3683_v60 = vpop.eup %3682 }
 0xb54   : > { %v2546_v62 = vmul.f32 %v3683_v60, %v3679_v54 }
 0xb56   : > { %v2547_v63 = vpack.c.bf16 %v2546_v62, %v2545_v61 }
 0xb58   : > { %3401 = vmatmul.mubr.msk.bf16.vlgmr.msra.gmra.mrb[44].mxu1 %vm1200_vm7, %v2547_v63 }
 0xb59   : > { %3414 = vmatprep.mubr.msk.bf16.mxu1 %vm4255_vm0, %v4254_v3  ;;  %3413 = vmatpush3.bf16.msra.mxu1 %v3671_v11 }
 0xc2b   : > { %v2585_v5 = vpop.f32.mrb[44].mxu1 }
 0xc2c   : > { %v3402_v6 = vpop.f32.mrb[45].mxu1 }
 0xc2d   : > { %v2588_v8 = vpop.f32.mrb[46].mxu1 }
 0xc2e   : > { %v2592_v9 = vpack.c.bf16 %v2588_v8, %v2585_v5  ;;  %v3403_v10 = vpop.f32.mrb[47].mxu1 }
 0xc30   : > { %3409 = vmatmul.mubr.msk.bf16.vlgmr.msra.gmra.mrb[48].mxu0 %vm1646_vm10, %v2592_v9 }
 0xc31   : > { %3422 = vmatprep.mubr.msk.f32.mxu0 %vm4255_vm0, %v4254_v3  ;;  %v4257_v3 = vmov 0.0|0.0  }
 0xc32   : > { %3431 = vmatprep.subr.bf16.mxu0 %v4257_v3 }
 0xd03   : > { %v2653_v13 = vpop.f32.mrb[48].mxu0 }
 0xd04   : > { %v2654_v14 = vadd.f32 %v3156_v12, %v2653_v13  ;;  %v3410_v15 = vpop.f32.mrb[49].mxu0 }
 0xd05   : > { %v2656_v16 = vpop.f32.mrb[50].mxu0 }
 0xd06   : > { %v2657_v17 = vadd.f32 %v3156_v12, %v2656_v16  ;;  %v3411_v18 = vpop.f32.mrb[51].mxu0  ;;  %v2660_v19 = vmax.f32 %v2654_v14, 0.0 }
 0xd08   : > { %v2661_v20 = vmax.f32 %v2657_v17, 0.0 }
 0xd0a   : > { %v2662_v21 = vpack.c.bf16 %v2661_v20, %v2660_v19 }
 0xd0c   : > { %3415 = vmatmul.mubr.msk.bf16.vlgmr.msra.gmra.mrb[48].mxu1 %vm1200_vm7, %v2662_v21 }
 0xddf   : > { %v2715_v23 = vpop.f32.mrb[48].mxu1 }
 0xde0   : > { %v3416_v24 = vpop.f32.mrb[49].mxu1  ;;  %v2716_v26 = vadd.f32 %v3160_v22, %v2715_v23 }
 0xde1   : > { %v2718_v25 = vpop.f32.mrb[50].mxu1 }
 0xde2   : > { %v2719_v27 = vadd.f32 %v3160_v22, %v2718_v25  ;;  %v3417_v28 = vpop.f32.mrb[51].mxu1 }
 0xde4   : > { %v3432_v1 = vpack.c.bf16 %v2719_v27, %v2716_v26 }
 0xde6   : > { %3434 = vmatpush3.bf16.xpose.msk.msra.mxu0 %vm5122_vm12, %v3432_v1 }
 0xded   : > { %3423 = vmatmul.mubr.msk.f32.vlgmr.msra.gmra.mrb[46].mxu0 %vm2434_vm11, %v4256_v30 }
 0xec0   : > { %v2794_v7 = vpop.f32.mrb[46].mxu0 }
 0xec1   : > { %v3166_v29 = vmul.f32 -1.442695, %v2794_v7  ;;  %v3424_v31 = vpop.f32.mrb[47].mxu0 }
 0xec3   : > { %3684 = vpow2.f32 %v3166_v29 }
 0xecd   : > { %v3685_v32 = vpop.eup %3684 }
 0xece   : > { %v2801_v33 = vadd.f32 1.0, %v3685_v32 }
 0xed0   : > { %3686 = vrcp.f32 %v2801_v33 }
 0xeda   : > { %v3687_v30 = vpop.eup %3686 }
 0xedb   : > { %2805 = vst.msk [vmem:[%s973_s3] sm:$0x1] %vm2804_vm15, %v3687_v30 }
 0xedc   : > { %4149 = shalt.err (!%p4146_p11)
}
 0xedd   : > { %s4150_s6 = scalar_lea.hbm %s5171_s11, 16  ;;  %s4154_s4 = scalar_lea.hbm %s5338_s5, 32 }
 0xede   : > { %p4151_p13 = scmp.ne.s32.totalorder %s5171_s11, %s4150_s6  ;;  %p4155_p6 = scmp.lt.u32.totalorder %s5171_s11, %s5338_s5 }
 0xedf   : > { %p4156_p5 = scmp.lt.u32.totalorder %s4154_s4, %s4150_s6  ;;  %p4158_p12 = scmp.lt.u32.totalorder %s4150_s6, %s5171_s11 }
 0xee0   : > { %p4152_p0 = pnand %p4151_p13, %p5339_p10 }
 0xee1   : > { %p4157_p9 = por %p4156_p5, %p4155_p6 }
 0xee2   : > { %p4153_p1 = pneg %p4152_p0 }
 0xee3   : > { %p4159_p2 = por %p4158_p12, %p4157_p9 }
 0xee5   : > { %p4160_p3 = pnand %p4159_p2, %p4153_p1 }
 0xee7   : > { %4163 = shalt.err (!%p4160_p3)
}
 0xee8   : > { %3499 = dma.vmem_to_hbm [thread:$0]  (%p5339_p10), %s5173_s20, 16, %s5171_s11, %s2807_s24  }
 0xee9 PF: > { %s5340_s2 = sld [smem:[#allocation44_spill]]  ;;  %s5341_s30 = sld [smem:[#allocation41_spill]] }
 0xeea   : > { %s5342_s8 = sld [smem:[#allocation48_spill]] }
 0xeef   : > { %p3586_p4 = scmp.ge.s32.totalorder %s5340_s2, 2  ;;  %s2831_s26 = sand.u32 1, %s5341_s30  }
 0xef0   : > { %p5343_p7 = scmp.ne.s32.totalorder %s5342_s8, 0  ;;  %s2832_s0 = scalar_lea.sflag [#allocation6], %s2831_s26 }
 0xef2   : > { %p3551_p8 = pnand %p3586_p4, %p5343_p7 }
 0xef4   : > { %4217 = dma.done.wait (!%p3551_p8), %s2832_s0, 16  }
 0xef5   : > { %4219 = vsyncadd (!%p3551_p8), %s2832_s0, 4294967280  ;;  %s5344_s24 = sld [smem:[#allocation45_spill]]  ;;  %s5345_s7 = sld [smem:[#allocation42_spill]] }
 0xef6   : > { %s5346_s20 = sld [smem:[#allocation43_spill]]  ;;  %s5347_s3 = sld [smem:[#allocation46_spill]] }
 0xefb   : > { %p48_p11 = scmp.ge.s32.totalorder %s5344_s24, 4  }
 0xefd   :  { %50 = sbr.rel (!%p48_p11) target bundleno = 27 (0x1b), region = 232 }
 0xf04   :  { %2836 = vsyncpa [#allocation5], 1 }
 0xf05   :  { %2838 = vsyncpa [#allocation5 + $0x1], 1 }
 0xf06   :  { %2839 = vsyncpa [#allocation8], 1 }
 0xf07   :  { %2840 = vsyncpa [#allocation11], 1 }
 0xf08   :  { %2841 = vsyncpa [#allocation14], 1 }
 0xf09   :  { %2842 = vsyncpa [#allocation17], 1 }
 0xf0a   :  { %2843 = vsyncpa [#allocation20], 1 }
 0xf0b   :  { %2844 = vsyncpa [#allocation23], 1 }
 0xf0c   :  { %2845 = vsyncpa [#allocation26], 1 }
 0xf0d   :  { %2846 = vsyncpa [#allocation29], 1 }
 0xf0e   :  { %2847 = vsyncpa [#allocation6], 1 }
 0xf0f   :  { %2849 = vsyncpa [#allocation6 + $0x1], 1 }

</bundles_post_ra>
